<compile_context>
chip_gen: v7x
topology: tpu7x:2x2x1
jax: 0.10.0
libtpu: 0.0.40
codegen_flags: <defaults>
</compile_context>

<pallas_src>
import functools

import jax
import jax.numpy as jnp
from jax import lax
from jax.experimental import pallas as pl
from jax.experimental.pallas import tpu as pltpu


def _dp_fea_kernel(x_ref, w_ref, b_ref, out_ref, *, H, W, CIN, COUT, gamma, maxpad):
    # x_ref  : (1, CIN, FLAT)           y-padded + flat-extended input, FLAT = (H+2p)*W + 2p
    # w_ref  : (n_blk, COUT, 9*CIN)     weights, K ordered as (ky*3+kx)*CIN + ci
    # b_ref  : (n_blk, COUT, 1)         biases (lane-broadcast column)
    # out_ref: (1, n_blk, COUT, H*W)    lane-dense output
    HW = H * W
    OFF = maxpad + maxpad * W          # flat offset of output pixel (0, 0)
    # column index (w coordinate) of every output lane, computed once.
    col = lax.broadcasted_iota(jnp.int32, (1, HW), 1) % W

    for i in range(gamma + 1):
        d = 2 ** i
        taps = []
        for ky in range(3):
            for kx in range(3):
                s = (ky - 1) * d * W + (kx - 1) * d
                # Shifted window over the flattened y-padded grid (lane-dense).
                win = x_ref[0, :, OFF + s:OFF + s + HW]            # (CIN, HW)
                # Horizontal taps wrap across rows in the flat layout; mask the
                # columns that would read outside [0, W).  Vertical taps are
                # handled by the y zero-padding, no mask needed.
                if kx == 0:
                    win = jnp.where(col >= d, win, 0.0)
                elif kx == 2:
                    win = jnp.where(col < W - d, win, 0.0)
                taps.append(win)
        im2col = jnp.concatenate(taps, axis=0)                     # (9*CIN, HW)
        acc = jnp.dot(w_ref[i], im2col,
                      preferred_element_type=jnp.float32)          # (COUT, HW)
        out = acc + b_ref[i]                                       # (COUT,1) lane-broadcast
        if i == 0:
            # PyTorch module applies ReLU only to the first block's output.
            out = jnp.maximum(out, 0.0)
        out_ref[0, i] = out.astype(out_ref.dtype)


def dp_fea_forward(x_nchw, weights, biases, gamma=3):
    """x_nchw: (N, CIN, H, W); weights: (gamma+1, 3, 3, CIN, COUT) [HWIO]; biases: (gamma+1, COUT)."""
    N, CIN, H, W = x_nchw.shape
    n_blk = gamma + 1
    COUT = weights.shape[-1]
    mp = 2 ** gamma
    HW = H * W
    FLAT = (H + 2 * mp) * W + 2 * mp

    # Cheap wrapper-side layout plumbing (all tiny pads / free reshapes):
    #   y-pad -> flatten rows -> extend the flat axis by mp on each side so every
    #   tap window is a static in-bounds lane slice inside the kernel.
    x_ypad = jnp.pad(x_nchw, ((0, 0), (0, 0), (mp, mp), (0, 0)))
    x_flat = x_ypad.reshape(N, CIN, (H + 2 * mp) * W)
    x_ext = jnp.pad(x_flat, ((0, 0), (0, 0), (mp, mp)))            # (N, CIN, FLAT)

    # Weights -> (n_blk, COUT, 9*CIN) with K index (ky*3+kx)*CIN + ci; bias -> column.
    w2 = jnp.transpose(weights, (0, 4, 1, 2, 3)).reshape(n_blk, COUT, 9 * CIN)
    b2 = biases.reshape(n_blk, COUT, 1)

    kernel = functools.partial(_dp_fea_kernel, H=H, W=W, CIN=CIN, COUT=COUT,
                               gamma=gamma, maxpad=mp)
    out = pl.pallas_call(
        kernel,
        out_shape=jax.ShapeDtypeStruct((N, n_blk, COUT, HW), x_nchw.dtype),
        grid_spec=pltpu.PrefetchScalarGridSpec(
            num_scalar_prefetch=0,
            grid=(N,),
            in_specs=[
                pl.BlockSpec((1, CIN, FLAT), lambda n: (n, 0, 0)),
                pl.BlockSpec((n_blk, COUT, 9 * CIN), lambda n: (0, 0, 0)),
                pl.BlockSpec((n_blk, COUT, 1), lambda n: (0, 0, 0)),
            ],
            out_specs=pl.BlockSpec((1, n_blk, COUT, HW), lambda n: (n, 0, 0, 0)),
        ),
        compiler_params=pltpu.CompilerParams(dimension_semantics=("parallel",)),
    )(x_ext, w2, b2)

    # (N, n_blk, COUT, H*W) -> (N, n_blk*COUT, H, W): pure row-major reshape,
    # matches torch.cat(dim=1) channel ordering.  No transpose needed.
    return out.reshape(N, n_blk * COUT, H, W)


def dp_fea_reference(x_nchw, weights, biases, gamma=3):
    """Pure-JAX reference (lax.conv_general_dilated) reproducing the PyTorch forward."""
    x = jnp.transpose(x_nchw, (0, 2, 3, 1))
    outs = []
    for i in range(gamma + 1):
        d = 2 ** i
        y = lax.conv_general_dilated(
            x, weights[i], window_strides=(1, 1),
            padding=((d, d), (d, d)), rhs_dilation=(d, d),
            dimension_numbers=("NHWC", "HWIO", "NHWC"))
        y = y + biases[i]
        if i == 0:
            y = jnp.maximum(y, 0.0)
        outs.append(jnp.transpose(y, (0, 3, 1, 2)))
    return jnp.concatenate(outs, axis=1)


if __name__ == "__main__":
    # Small shapes consistent with the module: batch=2, in_channel=8, depth=8,
    # spatial 16x16, gamma=3 (dilations 1, 2, 4, 8).
    N, CIN, H, W = 2, 8, 16, 16
    DEPTH, GAMMA = 8, 3

    key = jax.random.PRNGKey(0)
    kx, kw, kb = jax.random.split(key, 3)

    x = jax.random.normal(kx, (N, CIN, H, W), dtype=jnp.float32)
    # Synthetic parameters in HWIO layout (PyTorch Conv2d OIHW transposed).
    weights = 0.1 * jax.random.normal(kw, (GAMMA + 1, 3, 3, CIN, DEPTH), dtype=jnp.float32)
    biases = 0.01 * jax.random.normal(kb, (GAMMA + 1, DEPTH), dtype=jnp.float32)

    out = dp_fea_forward(x, weights, biases, gamma=GAMMA)
    out = jax.block_until_ready(out)

    ref = dp_fea_reference(x, weights, biases, gamma=GAMMA)
    assert out.shape == (N, (GAMMA + 1) * DEPTH, H, W), out.shape
    assert jnp.allclose(out, ref, atol=1e-4, rtol=1e-4), float(jnp.max(jnp.abs(out - ref)))

    print("KERNEL_OK")
</pallas_src>

<mosaic_0001>
module attributes {stable_mosaic.version = 11 : i64} {
  func.func @_dp_fea_kernel(%arg0: i32, %arg1: memref<1x8x528xf32, #tpu.memory_space<vmem>>, %arg2: memref<4x8x72xf32, #tpu.memory_space<vmem>>, %arg3: memref<4x8x1xf32, #tpu.memory_space<vmem>>, %arg4: memref<1x4x8x256xf32, #tpu.memory_space<vmem>>) attributes {dimension_semantics = [#tpu.dimension_semantics<parallel>], iteration_bounds = array<i64: 2>, scalar_prefetch = 0 : i64, scratch_operands = 0 : i64, tpu.core_type = #tpu.core_type<tc>, window_params = [{transform_indices = @transform_0, window_bounds = array<i64: 1, 8, 528>}, {pipeline_mode = #tpu.pipeline_mode<synchronous>, transform_indices = @transform_1, window_bounds = array<i64: 4, 8, 72>}, {pipeline_mode = #tpu.pipeline_mode<synchronous>, transform_indices = @transform_2, window_bounds = array<i64: 4, 8, 1>}, {transform_indices = @transform_3, window_bounds = array<i64: 1, 4, 8, 256>}]} {
    %0 = tpu.iota {dimensions = array<i32: 1>} : vector<1x256xi32>
    %c16_i32 = arith.constant 16 : i32
    %c0_i32 = arith.constant 0 : i32
    %1 = arith.cmpi eq, %c16_i32, %c0_i32 : i32
    %c1_i32 = arith.constant 1 : i32
    %2 = arith.select %1, %c1_i32, %c16_i32 : i32
    %3 = vector.broadcast %2 : i32 to vector<1x256xi32>
    %4 = arith.remsi %0, %3 : vector<1x256xi32>
    %c0_i32_0 = arith.constant 0 : i32
    %5 = vector.broadcast %c0_i32_0 : i32 to vector<1x256xi32>
    %6 = arith.cmpi ne, %4, %5 : vector<1x256xi32>
    %c0_i32_1 = arith.constant 0 : i32
    %7 = vector.broadcast %c0_i32_1 : i32 to vector<1x256xi32>
    %8 = arith.cmpi slt, %4, %7 : vector<1x256xi32>
    %c0_i32_2 = arith.constant 0 : i32
    %9 = arith.cmpi slt, %2, %c0_i32_2 : i32
    %10 = vector.broadcast %9 : i1 to vector<1x256xi1>
    %11 = vector.broadcast %10 : vector<1x256xi1> to vector<1x256xi1>
    %12 = arith.xori %8, %11 : vector<1x256xi1>
    %13 = arith.andi %12, %6 : vector<1x256xi1>
    %14 = vector.broadcast %2 : i32 to vector<1x256xi32>
    %15 = arith.addi %4, %14 : vector<1x256xi32>
    %16 = arith.select %13, %15, %4 : vector<1x256xi1>, vector<1x256xi32>
    %c0 = arith.constant 0 : index
    %c0_3 = arith.constant 0 : index
    %c119 = arith.constant 119 : index
    %17 = vector.load %arg1[%c0, %c0_3, %c119] : memref<1x8x528xf32, #tpu.memory_space<vmem>>, vector<1x8x256xf32>
    %18 = vector.shape_cast %17 : vector<1x8x256xf32> to vector<8x256xf32>
    %c1_i32_4 = arith.constant 1 : i32
    %19 = vector.broadcast %c1_i32_4 : i32 to vector<1x256xi32>
    %20 = arith.cmpi sge, %16, %19 : vector<1x256xi32>
    %cst = arith.constant 0.000000e+00 : f32
    %21 = vector.shape_cast %20 : vector<1x256xi1> to vector<1x256xi1>
    %22 = vector.broadcast %21 : vector<1x256xi1> to vector<8x256xi1>
    %23 = vector.broadcast %cst : f32 to vector<8x256xf32>
    %24 = arith.select %22, %18, %23 : vector<8x256xi1>, vector<8x256xf32>
    %c0_5 = arith.constant 0 : index
    %c0_6 = arith.constant 0 : index
    %c120 = arith.constant 120 : index
    %25 = vector.load %arg1[%c0_5, %c0_6, %c120] : memref<1x8x528xf32, #tpu.memory_space<vmem>>, vector<1x8x256xf32>
    %26 = vector.shape_cast %25 : vector<1x8x256xf32> to vector<8x256xf32>
    %c0_7 = arith.constant 0 : index
    %c0_8 = arith.constant 0 : index
    %c121 = arith.constant 121 : index
    %27 = vector.load %arg1[%c0_7, %c0_8, %c121] : memref<1x8x528xf32, #tpu.memory_space<vmem>>, vector<1x8x256xf32>
    %28 = vector.shape_cast %27 : vector<1x8x256xf32> to vector<8x256xf32>
    %c15_i32 = arith.constant 15 : i32
    %29 = vector.broadcast %c15_i32 : i32 to vector<1x256xi32>
    %30 = arith.cmpi slt, %16, %29 : vector<1x256xi32>
    %cst_9 = arith.constant 0.000000e+00 : f32
    %31 = vector.shape_cast %30 : vector<1x256xi1> to vector<1x256xi1>
    %32 = vector.broadcast %31 : vector<1x256xi1> to vector<8x256xi1>
    %33 = vector.broadcast %cst_9 : f32 to vector<8x256xf32>
    %34 = arith.select %32, %28, %33 : vector<8x256xi1>, vector<8x256xf32>
    %c0_10 = arith.constant 0 : index
    %c0_11 = arith.constant 0 : index
    %c135 = arith.constant 135 : index
    %35 = vector.load %arg1[%c0_10, %c0_11, %c135] : memref<1x8x528xf32, #tpu.memory_space<vmem>>, vector<1x8x256xf32>
    %36 = vector.shape_cast %35 : vector<1x8x256xf32> to vector<8x256xf32>
    %c1_i32_12 = arith.constant 1 : i32
    %37 = vector.broadcast %c1_i32_12 : i32 to vector<1x256xi32>
    %38 = arith.cmpi sge, %16, %37 : vector<1x256xi32>
    %cst_13 = arith.constant 0.000000e+00 : f32
    %39 = vector.shape_cast %38 : vector<1x256xi1> to vector<1x256xi1>
    %40 = vector.broadcast %39 : vector<1x256xi1> to vector<8x256xi1>
    %41 = vector.broadcast %cst_13 : f32 to vector<8x256xf32>
    %42 = arith.select %40, %36, %41 : vector<8x256xi1>, vector<8x256xf32>
    %c0_14 = arith.constant 0 : index
    %c0_15 = arith.constant 0 : index
    %c136 = arith.constant 136 : index
    %43 = vector.load %arg1[%c0_14, %c0_15, %c136] : memref<1x8x528xf32, #tpu.memory_space<vmem>>, vector<1x8x256xf32>
    %44 = vector.shape_cast %43 : vector<1x8x256xf32> to vector<8x256xf32>
    %c0_16 = arith.constant 0 : index
    %c0_17 = arith.constant 0 : index
    %c137 = arith.constant 137 : index
    %45 = vector.load %arg1[%c0_16, %c0_17, %c137] : memref<1x8x528xf32, #tpu.memory_space<vmem>>, vector<1x8x256xf32>
    %46 = vector.shape_cast %45 : vector<1x8x256xf32> to vector<8x256xf32>
    %c15_i32_18 = arith.constant 15 : i32
    %47 = vector.broadcast %c15_i32_18 : i32 to vector<1x256xi32>
    %48 = arith.cmpi slt, %16, %47 : vector<1x256xi32>
    %cst_19 = arith.constant 0.000000e+00 : f32
    %49 = vector.shape_cast %48 : vector<1x256xi1> to vector<1x256xi1>
    %50 = vector.broadcast %49 : vector<1x256xi1> to vector<8x256xi1>
    %51 = vector.broadcast %cst_19 : f32 to vector<8x256xf32>
    %52 = arith.select %50, %46, %51 : vector<8x256xi1>, vector<8x256xf32>
    %c0_20 = arith.constant 0 : index
    %c0_21 = arith.constant 0 : index
    %c151 = arith.constant 151 : index
    %53 = vector.load %arg1[%c0_20, %c0_21, %c151] : memref<1x8x528xf32, #tpu.memory_space<vmem>>, vector<1x8x256xf32>
    %54 = vector.shape_cast %53 : vector<1x8x256xf32> to vector<8x256xf32>
    %c1_i32_22 = arith.constant 1 : i32
    %55 = vector.broadcast %c1_i32_22 : i32 to vector<1x256xi32>
    %56 = arith.cmpi sge, %16, %55 : vector<1x256xi32>
    %cst_23 = arith.constant 0.000000e+00 : f32
    %57 = vector.shape_cast %56 : vector<1x256xi1> to vector<1x256xi1>
    %58 = vector.broadcast %57 : vector<1x256xi1> to vector<8x256xi1>
    %59 = vector.broadcast %cst_23 : f32 to vector<8x256xf32>
    %60 = arith.select %58, %54, %59 : vector<8x256xi1>, vector<8x256xf32>
    %c0_24 = arith.constant 0 : index
    %c0_25 = arith.constant 0 : index
    %c152 = arith.constant 152 : index
    %61 = vector.load %arg1[%c0_24, %c0_25, %c152] : memref<1x8x528xf32, #tpu.memory_space<vmem>>, vector<1x8x256xf32>
    %62 = vector.shape_cast %61 : vector<1x8x256xf32> to vector<8x256xf32>
    %c0_26 = arith.constant 0 : index
    %c0_27 = arith.constant 0 : index
    %c153 = arith.constant 153 : index
    %63 = vector.load %arg1[%c0_26, %c0_27, %c153] : memref<1x8x528xf32, #tpu.memory_space<vmem>>, vector<1x8x256xf32>
    %64 = vector.shape_cast %63 : vector<1x8x256xf32> to vector<8x256xf32>
    %c15_i32_28 = arith.constant 15 : i32
    %65 = vector.broadcast %c15_i32_28 : i32 to vector<1x256xi32>
    %66 = arith.cmpi slt, %16, %65 : vector<1x256xi32>
    %cst_29 = arith.constant 0.000000e+00 : f32
    %67 = vector.shape_cast %66 : vector<1x256xi1> to vector<1x256xi1>
    %68 = vector.broadcast %67 : vector<1x256xi1> to vector<8x256xi1>
    %69 = vector.broadcast %cst_29 : f32 to vector<8x256xf32>
    %70 = arith.select %68, %64, %69 : vector<8x256xi1>, vector<8x256xf32>
    %71 = tpu.concatenate %24, %26, %34, %42, %44, %52, %60, %62, %70 in 0 : vector<8x256xf32>, vector<8x256xf32>, vector<8x256xf32>, vector<8x256xf32>, vector<8x256xf32>, vector<8x256xf32>, vector<8x256xf32>, vector<8x256xf32>, vector<8x256xf32> -> vector<72x256xf32>
    %c0_30 = arith.constant 0 : index
    %c0_31 = arith.constant 0 : index
    %c0_32 = arith.constant 0 : index
    %72 = vector.load %arg2[%c0_30, %c0_31, %c0_32] : memref<4x8x72xf32, #tpu.memory_space<vmem>>, vector<1x8x72xf32>
    %73 = vector.shape_cast %72 : vector<1x8x72xf32> to vector<8x72xf32>
    %cst_33 = arith.constant dense<0.000000e+00> : vector<8x256xf32>
    %74 = tpu.matmul %73, %71, %cst_33 {dimension_numbers = #tpu.dot_dimension_numbers<[1], [0], [0], [1], [0, 0, 1, 1], [], []>} : vector<8x72xf32>, vector<72x256xf32>, vector<8x256xf32> -> vector<8x256xf32>
    %c0_34 = arith.constant 0 : index
    %c0_35 = arith.constant 0 : index
    %c0_36 = arith.constant 0 : index
    %75 = vector.load %arg3[%c0_34, %c0_35, %c0_36] : memref<4x8x1xf32, #tpu.memory_space<vmem>>, vector<1x8x1xf32>
    %76 = vector.shape_cast %75 : vector<1x8x1xf32> to vector<8x1xf32>
    %77 = vector.broadcast %76 : vector<8x1xf32> to vector<8x256xf32>
    %78 = arith.addf %74, %77 : vector<8x256xf32>
    %cst_37 = arith.constant 0.000000e+00 : f32
    %79 = vector.broadcast %cst_37 : f32 to vector<8x256xf32>
    %80 = arith.maximumf %78, %79 : vector<8x256xf32>
    %c0_38 = arith.constant 0 : index
    %c0_39 = arith.constant 0 : index
    %c0_40 = arith.constant 0 : index
    %c0_41 = arith.constant 0 : index
    %81 = vector.load %arg4[%c0_38, %c0_39, %c0_40, %c0_41] : memref<1x4x8x256xf32, #tpu.memory_space<vmem>>, vector<1x1x8x256xf32>
    %82 = vector.shape_cast %81 : vector<1x1x8x256xf32> to vector<8x256xf32>
    %83 = vector.shape_cast %80 : vector<8x256xf32> to vector<1x1x8x256xf32>
    tpu.vector_store %arg4[%c0_38, %c0_39, %c0_40, %c0_41], %83 {strides = array<i32>} : memref<1x4x8x256xf32, #tpu.memory_space<vmem>>, vector<1x1x8x256xf32>,
    %c0_42 = arith.constant 0 : index
    %c0_43 = arith.constant 0 : index
    %c102 = arith.constant 102 : index
    %84 = vector.load %arg1[%c0_42, %c0_43, %c102] : memref<1x8x528xf32, #tpu.memory_space<vmem>>, vector<1x8x256xf32>
    %85 = vector.shape_cast %84 : vector<1x8x256xf32> to vector<8x256xf32>
    %c2_i32 = arith.constant 2 : i32
    %86 = vector.broadcast %c2_i32 : i32 to vector<1x256xi32>
    %87 = arith.cmpi sge, %16, %86 : vector<1x256xi32>
    %cst_44 = arith.constant 0.000000e+00 : f32
    %88 = vector.shape_cast %87 : vector<1x256xi1> to vector<1x256xi1>
    %89 = vector.broadcast %88 : vector<1x256xi1> to vector<8x256xi1>
    %90 = vector.broadcast %cst_44 : f32 to vector<8x256xf32>
    %91 = arith.select %89, %85, %90 : vector<8x256xi1>, vector<8x256xf32>
    %c0_45 = arith.constant 0 : index
    %c0_46 = arith.constant 0 : index
    %c104 = arith.constant 104 : index
    %92 = vector.load %arg1[%c0_45, %c0_46, %c104] : memref<1x8x528xf32, #tpu.memory_space<vmem>>, vector<1x8x256xf32>
    %93 = vector.shape_cast %92 : vector<1x8x256xf32> to vector<8x256xf32>
    %c0_47 = arith.constant 0 : index
    %c0_48 = arith.constant 0 : index
    %c106 = arith.constant 106 : index
    %94 = vector.load %arg1[%c0_47, %c0_48, %c106] : memref<1x8x528xf32, #tpu.memory_space<vmem>>, vector<1x8x256xf32>
    %95 = vector.shape_cast %94 : vector<1x8x256xf32> to vector<8x256xf32>
    %c14_i32 = arith.constant 14 : i32
    %96 = vector.broadcast %c14_i32 : i32 to vector<1x256xi32>
    %97 = arith.cmpi slt, %16, %96 : vector<1x256xi32>
    %cst_49 = arith.constant 0.000000e+00 : f32
    %98 = vector.shape_cast %97 : vector<1x256xi1> to vector<1x256xi1>
    %99 = vector.broadcast %98 : vector<1x256xi1> to vector<8x256xi1>
    %100 = vector.broadcast %cst_49 : f32 to vector<8x256xf32>
    %101 = arith.select %99, %95, %100 : vector<8x256xi1>, vector<8x256xf32>
    %c0_50 = arith.constant 0 : index
    %c0_51 = arith.constant 0 : index
    %c134 = arith.constant 134 : index
    %102 = vector.load %arg1[%c0_50, %c0_51, %c134] : memref<1x8x528xf32, #tpu.memory_space<vmem>>, vector<1x8x256xf32>
    %103 = vector.shape_cast %102 : vector<1x8x256xf32> to vector<8x256xf32>
    %c2_i32_52 = arith.constant 2 : i32
    %104 = vector.broadcast %c2_i32_52 : i32 to vector<1x256xi32>
    %105 = arith.cmpi sge, %16, %104 : vector<1x256xi32>
    %cst_53 = arith.constant 0.000000e+00 : f32
    %106 = vector.shape_cast %105 : vector<1x256xi1> to vector<1x256xi1>
    %107 = vector.broadcast %106 : vector<1x256xi1> to vector<8x256xi1>
    %108 = vector.broadcast %cst_53 : f32 to vector<8x256xf32>
    %109 = arith.select %107, %103, %108 : vector<8x256xi1>, vector<8x256xf32>
    %c0_54 = arith.constant 0 : index
    %c0_55 = arith.constant 0 : index
    %c136_56 = arith.constant 136 : index
    %110 = vector.load %arg1[%c0_54, %c0_55, %c136_56] : memref<1x8x528xf32, #tpu.memory_space<vmem>>, vector<1x8x256xf32>
    %111 = vector.shape_cast %110 : vector<1x8x256xf32> to vector<8x256xf32>
    %c0_57 = arith.constant 0 : index
    %c0_58 = arith.constant 0 : index
    %c138 = arith.constant 138 : index
    %112 = vector.load %arg1[%c0_57, %c0_58, %c138] : memref<1x8x528xf32, #tpu.memory_space<vmem>>, vector<1x8x256xf32>
    %113 = vector.shape_cast %112 : vector<1x8x256xf32> to vector<8x256xf32>
    %c14_i32_59 = arith.constant 14 : i32
    %114 = vector.broadcast %c14_i32_59 : i32 to vector<1x256xi32>
    %115 = arith.cmpi slt, %16, %114 : vector<1x256xi32>
    %cst_60 = arith.constant 0.000000e+00 : f32
    %116 = vector.shape_cast %115 : vector<1x256xi1> to vector<1x256xi1>
    %117 = vector.broadcast %116 : vector<1x256xi1> to vector<8x256xi1>
    %118 = vector.broadcast %cst_60 : f32 to vector<8x256xf32>
    %119 = arith.select %117, %113, %118 : vector<8x256xi1>, vector<8x256xf32>
    %c0_61 = arith.constant 0 : index
    %c0_62 = arith.constant 0 : index
    %c166 = arith.constant 166 : index
    %120 = vector.load %arg1[%c0_61, %c0_62, %c166] : memref<1x8x528xf32, #tpu.memory_space<vmem>>, vector<1x8x256xf32>
    %121 = vector.shape_cast %120 : vector<1x8x256xf32> to vector<8x256xf32>
    %c2_i32_63 = arith.constant 2 : i32
    %122 = vector.broadcast %c2_i32_63 : i32 to vector<1x256xi32>
    %123 = arith.cmpi sge, %16, %122 : vector<1x256xi32>
    %cst_64 = arith.constant 0.000000e+00 : f32
    %124 = vector.shape_cast %123 : vector<1x256xi1> to vector<1x256xi1>
    %125 = vector.broadcast %124 : vector<1x256xi1> to vector<8x256xi1>
    %126 = vector.broadcast %cst_64 : f32 to vector<8x256xf32>
    %127 = arith.select %125, %121, %126 : vector<8x256xi1>, vector<8x256xf32>
    %c0_65 = arith.constant 0 : index
    %c0_66 = arith.constant 0 : index
    %c168 = arith.constant 168 : index
    %128 = vector.load %arg1[%c0_65, %c0_66, %c168] : memref<1x8x528xf32, #tpu.memory_space<vmem>>, vector<1x8x256xf32>
    %129 = vector.shape_cast %128 : vector<1x8x256xf32> to vector<8x256xf32>
    %c0_67 = arith.constant 0 : index
    %c0_68 = arith.constant 0 : index
    %c170 = arith.constant 170 : index
    %130 = vector.load %arg1[%c0_67, %c0_68, %c170] : memref<1x8x528xf32, #tpu.memory_space<vmem>>, vector<1x8x256xf32>
    %131 = vector.shape_cast %130 : vector<1x8x256xf32> to vector<8x256xf32>
    %c14_i32_69 = arith.constant 14 : i32
    %132 = vector.broadcast %c14_i32_69 : i32 to vector<1x256xi32>
    %133 = arith.cmpi slt, %16, %132 : vector<1x256xi32>
    %cst_70 = arith.constant 0.000000e+00 : f32
    %134 = vector.shape_cast %133 : vector<1x256xi1> to vector<1x256xi1>
    %135 = vector.broadcast %134 : vector<1x256xi1> to vector<8x256xi1>
    %136 = vector.broadcast %cst_70 : f32 to vector<8x256xf32>
    %137 = arith.select %135, %131, %136 : vector<8x256xi1>, vector<8x256xf32>
    %138 = tpu.concatenate %91, %93, %101, %109, %111, %119, %127, %129, %137 in 0 : vector<8x256xf32>, vector<8x256xf32>, vector<8x256xf32>, vector<8x256xf32>, vector<8x256xf32>, vector<8x256xf32>, vector<8x256xf32>, vector<8x256xf32>, vector<8x256xf32> -> vector<72x256xf32>
    %c1 = arith.constant 1 : index
    %c0_71 = arith.constant 0 : index
    %c0_72 = arith.constant 0 : index
    %139 = vector.load %arg2[%c1, %c0_71, %c0_72] : memref<4x8x72xf32, #tpu.memory_space<vmem>>, vector<1x8x72xf32>
    %140 = vector.shape_cast %139 : vector<1x8x72xf32> to vector<8x72xf32>
    %cst_73 = arith.constant dense<0.000000e+00> : vector<8x256xf32>
    %141 = tpu.matmul %140, %138, %cst_73 {dimension_numbers = #tpu.dot_dimension_numbers<[1], [0], [0], [1], [0, 0, 1, 1], [], []>} : vector<8x72xf32>, vector<72x256xf32>, vector<8x256xf32> -> vector<8x256xf32>
    %c1_74 = arith.constant 1 : index
    %c0_75 = arith.constant 0 : index
    %c0_76 = arith.constant 0 : index
    %142 = vector.load %arg3[%c1_74, %c0_75, %c0_76] : memref<4x8x1xf32, #tpu.memory_space<vmem>>, vector<1x8x1xf32>
    %143 = vector.shape_cast %142 : vector<1x8x1xf32> to vector<8x1xf32>
    %144 = vector.broadcast %143 : vector<8x1xf32> to vector<8x256xf32>
    %145 = arith.addf %141, %144 : vector<8x256xf32>
    %c0_77 = arith.constant 0 : index
    %c1_78 = arith.constant 1 : index
    %c0_79 = arith.constant 0 : index
    %c0_80 = arith.constant 0 : index
    %146 = vector.load %arg4[%c0_77, %c1_78, %c0_79, %c0_80] : memref<1x4x8x256xf32, #tpu.memory_space<vmem>>, vector<1x1x8x256xf32>
    %147 = vector.shape_cast %146 : vector<1x1x8x256xf32> to vector<8x256xf32>
    %148 = vector.shape_cast %145 : vector<8x256xf32> to vector<1x1x8x256xf32>
    tpu.vector_store %arg4[%c0_77, %c1_78, %c0_79, %c0_80], %148 {strides = array<i32>} : memref<1x4x8x256xf32, #tpu.memory_space<vmem>>, vector<1x1x8x256xf32>,
    %c0_81 = arith.constant 0 : index
    %c0_82 = arith.constant 0 : index
    %c68 = arith.constant 68 : index
    %149 = vector.load %arg1[%c0_81, %c0_82, %c68] : memref<1x8x528xf32, #tpu.memory_space<vmem>>, vector<1x8x256xf32>
    %150 = vector.shape_cast %149 : vector<1x8x256xf32> to vector<8x256xf32>
    %c4_i32 = arith.constant 4 : i32
    %151 = vector.broadcast %c4_i32 : i32 to vector<1x256xi32>
    %152 = arith.cmpi sge, %16, %151 : vector<1x256xi32>
    %cst_83 = arith.constant 0.000000e+00 : f32
    %153 = vector.shape_cast %152 : vector<1x256xi1> to vector<1x256xi1>
    %154 = vector.broadcast %153 : vector<1x256xi1> to vector<8x256xi1>
    %155 = vector.broadcast %cst_83 : f32 to vector<8x256xf32>
    %156 = arith.select %154, %150, %155 : vector<8x256xi1>, vector<8x256xf32>
    %c0_84 = arith.constant 0 : index
    %c0_85 = arith.constant 0 : index
    %c72 = arith.constant 72 : index
    %157 = vector.load %arg1[%c0_84, %c0_85, %c72] : memref<1x8x528xf32, #tpu.memory_space<vmem>>, vector<1x8x256xf32>
    %158 = vector.shape_cast %157 : vector<1x8x256xf32> to vector<8x256xf32>
    %c0_86 = arith.constant 0 : index
    %c0_87 = arith.constant 0 : index
    %c76 = arith.constant 76 : index
    %159 = vector.load %arg1[%c0_86, %c0_87, %c76] : memref<1x8x528xf32, #tpu.memory_space<vmem>>, vector<1x8x256xf32>
    %160 = vector.shape_cast %159 : vector<1x8x256xf32> to vector<8x256xf32>
    %c12_i32 = arith.constant 12 : i32
    %161 = vector.broadcast %c12_i32 : i32 to vector<1x256xi32>
    %162 = arith.cmpi slt, %16, %161 : vector<1x256xi32>
    %cst_88 = arith.constant 0.000000e+00 : f32
    %163 = vector.shape_cast %162 : vector<1x256xi1> to vector<1x256xi1>
    %164 = vector.broadcast %163 : vector<1x256xi1> to vector<8x256xi1>
    %165 = vector.broadcast %cst_88 : f32 to vector<8x256xf32>
    %166 = arith.select %164, %160, %165 : vector<8x256xi1>, vector<8x256xf32>
    %c0_89 = arith.constant 0 : index
    %c0_90 = arith.constant 0 : index
    %c132 = arith.constant 132 : index
    %167 = vector.load %arg1[%c0_89, %c0_90, %c132] : memref<1x8x528xf32, #tpu.memory_space<vmem>>, vector<1x8x256xf32>
    %168 = vector.shape_cast %167 : vector<1x8x256xf32> to vector<8x256xf32>
    %c4_i32_91 = arith.constant 4 : i32
    %169 = vector.broadcast %c4_i32_91 : i32 to vector<1x256xi32>
    %170 = arith.cmpi sge, %16, %169 : vector<1x256xi32>
    %cst_92 = arith.constant 0.000000e+00 : f32
    %171 = vector.shape_cast %170 : vector<1x256xi1> to vector<1x256xi1>
    %172 = vector.broadcast %171 : vector<1x256xi1> to vector<8x256xi1>
    %173 = vector.broadcast %cst_92 : f32 to vector<8x256xf32>
    %174 = arith.select %172, %168, %173 : vector<8x256xi1>, vector<8x256xf32>
    %c0_93 = arith.constant 0 : index
    %c0_94 = arith.constant 0 : index
    %c136_95 = arith.constant 136 : index
    %175 = vector.load %arg1[%c0_93, %c0_94, %c136_95] : memref<1x8x528xf32, #tpu.memory_space<vmem>>, vector<1x8x256xf32>
    %176 = vector.shape_cast %175 : vector<1x8x256xf32> to vector<8x256xf32>
    %c0_96 = arith.constant 0 : index
    %c0_97 = arith.constant 0 : index
    %c140 = arith.constant 140 : index
    %177 = vector.load %arg1[%c0_96, %c0_97, %c140] : memref<1x8x528xf32, #tpu.memory_space<vmem>>, vector<1x8x256xf32>
    %178 = vector.shape_cast %177 : vector<1x8x256xf32> to vector<8x256xf32>
    %c12_i32_98 = arith.constant 12 : i32
    %179 = vector.broadcast %c12_i32_98 : i32 to vector<1x256xi32>
    %180 = arith.cmpi slt, %16, %179 : vector<1x256xi32>
    %cst_99 = arith.constant 0.000000e+00 : f32
    %181 = vector.shape_cast %180 : vector<1x256xi1> to vector<1x256xi1>
    %182 = vector.broadcast %181 : vector<1x256xi1> to vector<8x256xi1>
    %183 = vector.broadcast %cst_99 : f32 to vector<8x256xf32>
    %184 = arith.select %182, %178, %183 : vector<8x256xi1>, vector<8x256xf32>
    %c0_100 = arith.constant 0 : index
    %c0_101 = arith.constant 0 : index
    %c196 = arith.constant 196 : index
    %185 = vector.load %arg1[%c0_100, %c0_101, %c196] : memref<1x8x528xf32, #tpu.memory_space<vmem>>, vector<1x8x256xf32>
    %186 = vector.shape_cast %185 : vector<1x8x256xf32> to vector<8x256xf32>
    %c4_i32_102 = arith.constant 4 : i32
    %187 = vector.broadcast %c4_i32_102 : i32 to vector<1x256xi32>
    %188 = arith.cmpi sge, %16, %187 : vector<1x256xi32>
    %cst_103 = arith.constant 0.000000e+00 : f32
    %189 = vector.shape_cast %188 : vector<1x256xi1> to vector<1x256xi1>
    %190 = vector.broadcast %189 : vector<1x256xi1> to vector<8x256xi1>
    %191 = vector.broadcast %cst_103 : f32 to vector<8x256xf32>
    %192 = arith.select %190, %186, %191 : vector<8x256xi1>, vector<8x256xf32>
    %c0_104 = arith.constant 0 : index
    %c0_105 = arith.constant 0 : index
    %c200 = arith.constant 200 : index
    %193 = vector.load %arg1[%c0_104, %c0_105, %c200] : memref<1x8x528xf32, #tpu.memory_space<vmem>>, vector<1x8x256xf32>
    %194 = vector.shape_cast %193 : vector<1x8x256xf32> to vector<8x256xf32>
    %c0_106 = arith.constant 0 : index
    %c0_107 = arith.constant 0 : index
    %c204 = arith.constant 204 : index
    %195 = vector.load %arg1[%c0_106, %c0_107, %c204] : memref<1x8x528xf32, #tpu.memory_space<vmem>>, vector<1x8x256xf32>
    %196 = vector.shape_cast %195 : vector<1x8x256xf32> to vector<8x256xf32>
    %c12_i32_108 = arith.constant 12 : i32
    %197 = vector.broadcast %c12_i32_108 : i32 to vector<1x256xi32>
    %198 = arith.cmpi slt, %16, %197 : vector<1x256xi32>
    %cst_109 = arith.constant 0.000000e+00 : f32
    %199 = vector.shape_cast %198 : vector<1x256xi1> to vector<1x256xi1>
    %200 = vector.broadcast %199 : vector<1x256xi1> to vector<8x256xi1>
    %201 = vector.broadcast %cst_109 : f32 to vector<8x256xf32>
    %202 = arith.select %200, %196, %201 : vector<8x256xi1>, vector<8x256xf32>
    %203 = tpu.concatenate %156, %158, %166, %174, %176, %184, %192, %194, %202 in 0 : vector<8x256xf32>, vector<8x256xf32>, vector<8x256xf32>, vector<8x256xf32>, vector<8x256xf32>, vector<8x256xf32>, vector<8x256xf32>, vector<8x256xf32>, vector<8x256xf32> -> vector<72x256xf32>
    %c2 = arith.constant 2 : index
    %c0_110 = arith.constant 0 : index
    %c0_111 = arith.constant 0 : index
    %204 = vector.load %arg2[%c2, %c0_110, %c0_111] : memref<4x8x72xf32, #tpu.memory_space<vmem>>, vector<1x8x72xf32>
    %205 = vector.shape_cast %204 : vector<1x8x72xf32> to vector<8x72xf32>
    %cst_112 = arith.constant dense<0.000000e+00> : vector<8x256xf32>
    %206 = tpu.matmul %205, %203, %cst_112 {dimension_numbers = #tpu.dot_dimension_numbers<[1], [0], [0], [1], [0, 0, 1, 1], [], []>} : vector<8x72xf32>, vector<72x256xf32>, vector<8x256xf32> -> vector<8x256xf32>
    %c2_113 = arith.constant 2 : index
    %c0_114 = arith.constant 0 : index
    %c0_115 = arith.constant 0 : index
    %207 = vector.load %arg3[%c2_113, %c0_114, %c0_115] : memref<4x8x1xf32, #tpu.memory_space<vmem>>, vector<1x8x1xf32>
    %208 = vector.shape_cast %207 : vector<1x8x1xf32> to vector<8x1xf32>
    %209 = vector.broadcast %208 : vector<8x1xf32> to vector<8x256xf32>
    %210 = arith.addf %206, %209 : vector<8x256xf32>
    %c0_116 = arith.constant 0 : index
    %c2_117 = arith.constant 2 : index
    %c0_118 = arith.constant 0 : index
    %c0_119 = arith.constant 0 : index
    %211 = vector.load %arg4[%c0_116, %c2_117, %c0_118, %c0_119] : memref<1x4x8x256xf32, #tpu.memory_space<vmem>>, vector<1x1x8x256xf32>
    %212 = vector.shape_cast %211 : vector<1x1x8x256xf32> to vector<8x256xf32>
    %213 = vector.shape_cast %210 : vector<8x256xf32> to vector<1x1x8x256xf32>
    tpu.vector_store %arg4[%c0_116, %c2_117, %c0_118, %c0_119], %213 {strides = array<i32>} : memref<1x4x8x256xf32, #tpu.memory_space<vmem>>, vector<1x1x8x256xf32>,
    %c0_120 = arith.constant 0 : index
    %c0_121 = arith.constant 0 : index
    %c0_122 = arith.constant 0 : index
    %214 = vector.load %arg1[%c0_120, %c0_121, %c0_122] : memref<1x8x528xf32, #tpu.memory_space<vmem>>, vector<1x8x256xf32>
    %215 = vector.shape_cast %214 : vector<1x8x256xf32> to vector<8x256xf32>
    %c8_i32 = arith.constant 8 : i32
    %216 = vector.broadcast %c8_i32 : i32 to vector<1x256xi32>
    %217 = arith.cmpi sge, %16, %216 : vector<1x256xi32>
    %cst_123 = arith.constant 0.000000e+00 : f32
    %218 = vector.shape_cast %217 : vector<1x256xi1> to vector<1x256xi1>
    %219 = vector.broadcast %218 : vector<1x256xi1> to vector<8x256xi1>
    %220 = vector.broadcast %cst_123 : f32 to vector<8x256xf32>
    %221 = arith.select %219, %215, %220 : vector<8x256xi1>, vector<8x256xf32>
    %c0_124 = arith.constant 0 : index
    %c0_125 = arith.constant 0 : index
    %c8 = arith.constant 8 : index
    %222 = vector.load %arg1[%c0_124, %c0_125, %c8] : memref<1x8x528xf32, #tpu.memory_space<vmem>>, vector<1x8x256xf32>
    %223 = vector.shape_cast %222 : vector<1x8x256xf32> to vector<8x256xf32>
    %c0_126 = arith.constant 0 : index
    %c0_127 = arith.constant 0 : index
    %c16 = arith.constant 16 : index
    %224 = vector.load %arg1[%c0_126, %c0_127, %c16] : memref<1x8x528xf32, #tpu.memory_space<vmem>>, vector<1x8x256xf32>
    %225 = vector.shape_cast %224 : vector<1x8x256xf32> to vector<8x256xf32>
    %c8_i32_128 = arith.constant 8 : i32
    %226 = vector.broadcast %c8_i32_128 : i32 to vector<1x256xi32>
    %227 = arith.cmpi slt, %16, %226 : vector<1x256xi32>
    %cst_129 = arith.constant 0.000000e+00 : f32
    %228 = vector.shape_cast %227 : vector<1x256xi1> to vector<1x256xi1>
    %229 = vector.broadcast %228 : vector<1x256xi1> to vector<8x256xi1>
    %230 = vector.broadcast %cst_129 : f32 to vector<8x256xf32>
    %231 = arith.select %229, %225, %230 : vector<8x256xi1>, vector<8x256xf32>
    %c0_130 = arith.constant 0 : index
    %c0_131 = arith.constant 0 : index
    %c128 = arith.constant 128 : index
    %232 = vector.load %arg1[%c0_130, %c0_131, %c128] : memref<1x8x528xf32, #tpu.memory_space<vmem>>, vector<1x8x256xf32>
    %233 = vector.shape_cast %232 : vector<1x8x256xf32> to vector<8x256xf32>
    %c8_i32_132 = arith.constant 8 : i32
    %234 = vector.broadcast %c8_i32_132 : i32 to vector<1x256xi32>
    %235 = arith.cmpi sge, %16, %234 : vector<1x256xi32>
    %cst_133 = arith.constant 0.000000e+00 : f32
    %236 = vector.shape_cast %235 : vector<1x256xi1> to vector<1x256xi1>
    %237 = vector.broadcast %236 : vector<1x256xi1> to vector<8x256xi1>
    %238 = vector.broadcast %cst_133 : f32 to vector<8x256xf32>
    %239 = arith.select %237, %233, %238 : vector<8x256xi1>, vector<8x256xf32>
    %c0_134 = arith.constant 0 : index
    %c0_135 = arith.constant 0 : index
    %c136_136 = arith.constant 136 : index
    %240 = vector.load %arg1[%c0_134, %c0_135, %c136_136] : memref<1x8x528xf32, #tpu.memory_space<vmem>>, vector<1x8x256xf32>
    %241 = vector.shape_cast %240 : vector<1x8x256xf32> to vector<8x256xf32>
    %c0_137 = arith.constant 0 : index
    %c0_138 = arith.constant 0 : index
    %c144 = arith.constant 144 : index
    %242 = vector.load %arg1[%c0_137, %c0_138, %c144] : memref<1x8x528xf32, #tpu.memory_space<vmem>>, vector<1x8x256xf32>
    %243 = vector.shape_cast %242 : vector<1x8x256xf32> to vector<8x256xf32>
    %c8_i32_139 = arith.constant 8 : i32
    %244 = vector.broadcast %c8_i32_139 : i32 to vector<1x256xi32>
    %245 = arith.cmpi slt, %16, %244 : vector<1x256xi32>
    %cst_140 = arith.constant 0.000000e+00 : f32
    %246 = vector.shape_cast %245 : vector<1x256xi1> to vector<1x256xi1>
    %247 = vector.broadcast %246 : vector<1x256xi1> to vector<8x256xi1>
    %248 = vector.broadcast %cst_140 : f32 to vector<8x256xf32>
    %249 = arith.select %247, %243, %248 : vector<8x256xi1>, vector<8x256xf32>
    %c0_141 = arith.constant 0 : index
    %c0_142 = arith.constant 0 : index
    %c256 = arith.constant 256 : index
    %250 = vector.load %arg1[%c0_141, %c0_142, %c256] : memref<1x8x528xf32, #tpu.memory_space<vmem>>, vector<1x8x256xf32>
    %251 = vector.shape_cast %250 : vector<1x8x256xf32> to vector<8x256xf32>
    %c8_i32_143 = arith.constant 8 : i32
    %252 = vector.broadcast %c8_i32_143 : i32 to vector<1x256xi32>
    %253 = arith.cmpi sge, %16, %252 : vector<1x256xi32>
    %cst_144 = arith.constant 0.000000e+00 : f32
    %254 = vector.shape_cast %253 : vector<1x256xi1> to vector<1x256xi1>
    %255 = vector.broadcast %254 : vector<1x256xi1> to vector<8x256xi1>
    %256 = vector.broadcast %cst_144 : f32 to vector<8x256xf32>
    %257 = arith.select %255, %251, %256 : vector<8x256xi1>, vector<8x256xf32>
    %c0_145 = arith.constant 0 : index
    %c0_146 = arith.constant 0 : index
    %c264 = arith.constant 264 : index
    %258 = vector.load %arg1[%c0_145, %c0_146, %c264] : memref<1x8x528xf32, #tpu.memory_space<vmem>>, vector<1x8x256xf32>
    %259 = vector.shape_cast %258 : vector<1x8x256xf32> to vector<8x256xf32>
    %c0_147 = arith.constant 0 : index
    %c0_148 = arith.constant 0 : index
    %c272 = arith.constant 272 : index
    %260 = vector.load %arg1[%c0_147, %c0_148, %c272] : memref<1x8x528xf32, #tpu.memory_space<vmem>>, vector<1x8x256xf32>
    %261 = vector.shape_cast %260 : vector<1x8x256xf32> to vector<8x256xf32>
    %c8_i32_149 = arith.constant 8 : i32
    %262 = vector.broadcast %c8_i32_149 : i32 to vector<1x256xi32>
    %263 = arith.cmpi slt, %16, %262 : vector<1x256xi32>
    %cst_150 = arith.constant 0.000000e+00 : f32
    %264 = vector.shape_cast %263 : vector<1x256xi1> to vector<1x256xi1>
    %265 = vector.broadcast %264 : vector<1x256xi1> to vector<8x256xi1>
    %266 = vector.broadcast %cst_150 : f32 to vector<8x256xf32>
    %267 = arith.select %265, %261, %266 : vector<8x256xi1>, vector<8x256xf32>
    %268 = tpu.concatenate %221, %223, %231, %239, %241, %249, %257, %259, %267 in 0 : vector<8x256xf32>, vector<8x256xf32>, vector<8x256xf32>, vector<8x256xf32>, vector<8x256xf32>, vector<8x256xf32>, vector<8x256xf32>, vector<8x256xf32>, vector<8x256xf32> -> vector<72x256xf32>
    %c3 = arith.constant 3 : index
    %c0_151 = arith.constant 0 : index
    %c0_152 = arith.constant 0 : index
    %269 = vector.load %arg2[%c3, %c0_151, %c0_152] : memref<4x8x72xf32, #tpu.memory_space<vmem>>, vector<1x8x72xf32>
    %270 = vector.shape_cast %269 : vector<1x8x72xf32> to vector<8x72xf32>
    %cst_153 = arith.constant dense<0.000000e+00> : vector<8x256xf32>
    %271 = tpu.matmul %270, %268, %cst_153 {dimension_numbers = #tpu.dot_dimension_numbers<[1], [0], [0], [1], [0, 0, 1, 1], [], []>} : vector<8x72xf32>, vector<72x256xf32>, vector<8x256xf32> -> vector<8x256xf32>
    %c3_154 = arith.constant 3 : index
    %c0_155 = arith.constant 0 : index
    %c0_156 = arith.constant 0 : index
    %272 = vector.load %arg3[%c3_154, %c0_155, %c0_156] : memref<4x8x1xf32, #tpu.memory_space<vmem>>, vector<1x8x1xf32>
    %273 = vector.shape_cast %272 : vector<1x8x1xf32> to vector<8x1xf32>
    %274 = vector.broadcast %273 : vector<8x1xf32> to vector<8x256xf32>
    %275 = arith.addf %271, %274 : vector<8x256xf32>
    %c0_157 = arith.constant 0 : index
    %c3_158 = arith.constant 3 : index
    %c0_159 = arith.constant 0 : index
    %c0_160 = arith.constant 0 : index
    %276 = vector.load %arg4[%c0_157, %c3_158, %c0_159, %c0_160] : memref<1x4x8x256xf32, #tpu.memory_space<vmem>>, vector<1x1x8x256xf32>
    %277 = vector.shape_cast %276 : vector<1x1x8x256xf32> to vector<8x256xf32>
    %278 = vector.shape_cast %275 : vector<8x256xf32> to vector<1x1x8x256xf32>
    tpu.vector_store %arg4[%c0_157, %c3_158, %c0_159, %c0_160], %278 {strides = array<i32>} : memref<1x4x8x256xf32, #tpu.memory_space<vmem>>, vector<1x1x8x256xf32>,
    return
  }
  func.func @transform_0(%arg0: i32) -> (i32, i32, i32) {
    %c0_i32 = arith.constant 0 : i32
    %c0_i32_0 = arith.constant 0 : i32
    %c0_i32_1 = arith.constant 0 : i32
    return %arg0, %c0_i32, %c0_i32_0 : i32, i32, i32
  }
  func.func @transform_1(%arg0: i32) -> (i32, i32, i32) {
    %c0_i32 = arith.constant 0 : i32
    %c0_i32_0 = arith.constant 0 : i32
    %c0_i32_1 = arith.constant 0 : i32
    %c0_i32_2 = arith.constant 0 : i32
    return %c0_i32, %c0_i32_0, %c0_i32_1 : i32, i32, i32
  }
  func.func @transform_2(%arg0: i32) -> (i32, i32, i32) {
    %c0_i32 = arith.constant 0 : i32
    %c0_i32_0 = arith.constant 0 : i32
    %c0_i32_1 = arith.constant 0 : i32
    %c0_i32_2 = arith.constant 0 : i32
    return %c0_i32, %c0_i32_0, %c0_i32_1 : i32, i32, i32
  }
  func.func @transform_3(%arg0: i32) -> (i32, i32, i32, i32) {
    %c0_i32 = arith.constant 0 : i32
    %c0_i32_0 = arith.constant 0 : i32
    %c0_i32_1 = arith.constant 0 : i32
    %c0_i32_2 = arith.constant 0 : i32
    return %arg0, %c0_i32, %c0_i32_0, %c0_i32_1 : i32, i32, i32, i32
  }
}

</mosaic_0001>

<bundles_post_ra>
// kernel: tpu_custom_call.1
= control target key start
LH: loop header
LB: loop body
LE: loop exit
PB: predicated region body
PF: predicated region fallthrough
CT: control target
= control target key end

     0   :  { %8 = vsyncpa [#allocation3], 0  ;;  %s2192_s0 = inlined_call_operand.hbm [shape: f32[2,8,528], index: 0, kind: input, shape index: {}]   ;;  %s2193_s1 = inlined_call_operand.vmem [shape: f32[4,8,72], index: 1, kind: input, shape index: {}]   ;;  %s2194_s2 = inlined_call_operand.vmem [shape: f32[4,8,1], index: 2, kind: input, shape index: {}]   ;;  %s2195_s3 = inlined_call_operand.hbm [shape: f32[2,4,8,256], index: 3, kind: output, shape index: {}]  }
   0x1   :  { %10 = vsyncpa [#allocation3 + $0x1], 0 }
   0x2   :  { %11 = vsyncpa [#allocation4], 0 }
   0x3   :  { %13 = vsyncpa [#allocation4 + $0x1], 0  ;;  %s1610_s12 = smov 0   ;;  %s1612_s13 = smov 0  }
   0x4   :  { %s1614_s14 = smov 0   ;;  %s1616_s15 = smov 0  }
   0x5 LB: > { %s1631_s16 = sadd.s32 4294967295, %s1558_s15   ;;  %s1086_s17 = sadd.s32 4294967294, %s1558_s15   ;;  %s1558_s15 = sphi %s1616_s15, %s2247_s15   ;;  %s1554_s14 = sphi %s1614_s14, %s2246_s14   ;;  %s1550_s13 = sphi %s1612_s13, %s2245_s13   ;;  %s1546_s12 = sphi %s1610_s12, %s2244_s12  }
   0x6   : > { %s1635_s18 = sadd.s32 1, %s1558_s15   ;;  %s26_s19 = sadd.s32 1, %s1554_s14 }
   0x7   : > { %s23_s20 = ssub.s32 %s1558_s15, %s1635_s18  ;;  %p33_p0 = scmp.ne.s32.totalorder %s1554_s14, %s1550_s13 }
   0x8   : > { %p24_p1 = scmp.eq.s32.totalorder %s23_s20, 0  ;;  %p34_p2 = scmp.eq.s32.totalorder %s1558_s15, 0 }
   0x9   : > { %p39_p3 = scmp.ne.s32.totalorder %s1550_s13, %s1546_s12  ;;  %p40_p4 = scmp.eq.s32.totalorder %s1631_s16, 0 }
   0xa   : > { %s1647_s21 = scalar_select %p24_p1, %s1554_s14, %s26_s19  }
   0xb   : > { %p35_p5 = por %p34_p2, %p33_p0  ;;  %p1649_p6 = por %p40_p4, %p39_p3 }
   0xc   : > { %p105_p7 = scmp.eq.s32.totalorder %s1631_s16, 1  ;;  %p111_p8 = scmp.eq.s32.totalorder %s1086_s17, 1 }
   0xd   : > { %p1273_p10 = scmp.lt.s32.totalorder %s1558_s15, 2  ;;  %s137_s25 = sand.u32 1, %s1554_s14  }
   0xe   : > { %p1656_p11 = por %p105_p7, %p33_p0  ;;  %p1660_p12 = por %p111_p8, %p39_p3 }
   0xf   : > { %s1259_s26 = smul.u32 640, %s1558_s15  ;;  %p1671_p13 = pnand %p1273_p10, %p35_p5 }
  0x10   : > { %s2207_s23 = scalar_select %p1656_p11, 1, 0 }
  0x11   : > { %s2208_s24 = scalar_select %p1660_p12, 1, 0 }
  0x12   : > { %s1258_s27 = smul.u32 40, %s137_s25  ;;  %s1669_s30 = scalar_lea.hbm %s2192_s0, %s1259_s26 }
  0x13   : > { %s138_s7 = scalar_lea.sflag [#allocation3], %s137_s25  ;;  %s1462_s8 = scalar_lea.hbm %s1669_s30, 640 }
  0x14   : > { %s141_s5 = scalar_lea.vmem [#allocation2], %s1258_s27  ;;  %p1463_p2 = scmp.ne.s32.totalorder %s1669_s30, %s1462_s8 }
  0x15   : > { %s149_s6 = sshll.u32 %s141_s5, 4  ;;  %p1464_p3 = pneg %p1671_p13  ;;  %s1676_s6 = int_to_ptr.vmem [resolvable:$true] %s149_s6 }
  0x16   : > { %s1467_s11 = scalar_lea.hbm %s2192_s0, 1280  ;;  %p1468_p7 = scmp.lt.u32.totalorder %s1669_s30, %s2192_s0 }
  0x17   : > { %p1465_p4 = pnand %p1464_p3, %p1463_p2  ;;  %p1469_p8 = scmp.lt.u32.totalorder %s1467_s11, %s1462_s8 }
  0x18   : > { %p1471_p9 = scmp.lt.u32.totalorder %s1462_s8, %s1669_s30 }
  0x19   : > { %p1466_p5 = pneg %p1465_p4  ;;  %p1470_p10 = por %p1469_p8, %p1468_p7 }
  0x1b   : > { %p1472_p0 = por %p1471_p9, %p1470_p10 }
  0x1d   : > { %p1473_p1 = pnand %p1472_p0, %p1466_p5 }
  0x1f   : > { %1476 = shalt.err (!%p1473_p1)
}
  0x20   : > { %s1477_s20 = scalar_lea.vmem %s1676_s6, 640  ;;  %s1560_s25 = smov [#allocation2]  }
  0x21   : > { %p1478_p2 = scmp.ne.s32.totalorder %s1676_s6, %s1477_s20  ;;  %s1482_s26 = sshll.u32 %s1560_s25, 4  ;;  %s1483_s26 = int_to_ptr.vmem [resolvable:$false] %s1482_s26 }
  0x22   : > { %s1484_s27 = scalar_lea.vmem %s1483_s26, 1280  ;;  %p1485_p11 = scmp.lt.s32.totalorder %s1676_s6, %s1483_s26 }
  0x23   : > { %p1480_p4 = pnand %p1478_p2, %p1464_p3  ;;  %p1486_p7 = scmp.lt.s32.totalorder %s1484_s27, %s1477_s20 }
  0x25   : > { %p1481_p12 = pneg %p1480_p4  ;;  %p1487_p8 = por %p1486_p7, %p1485_p11 }
  0x27   : > { %p1488_p9 = pnand %p1487_p8, %p1481_p12 }
  0x29   : > { %1491 = shalt.err (!%p1488_p9)
}
  0x2a   : > { %1268 = dma.hbm_to_vmem [thread:$0]  (!%p1671_p13), %s1669_s30, 640, %s1676_s6, %s138_s7  }
  0x2b   : > { %p2210_p0 = scmp.lt.s32.totalorder %s1558_s15, 3  ;;  %p2211_p1 = scmp.ge.s32.totalorder %s1558_s15, 1 }
  0x2d   : > { %p155_p3 = pnand %p2211_p1, %p2210_p0 }
  0x2e   : > { %s1709_s28 = sand.u32 (!%p155_p3), 1, %s1550_s13  }
  0x2f   : > { %158 = sbr.rel (%p155_p3) target bundleno = 524 (0x20c), region = 32  ;;  %s161_s5 = scalar_lea.sflag (!%p155_p3), [#allocation3], %s1709_s28 }
  0x30   : > { %s1260_s29 = smul.u32 (!%p155_p3), 40, %s1709_s28 }
  0x32   : > { %s1713_s8 = scalar_lea.vmem (!%p155_p3), [#allocation2], %s1260_s29 }
  0x36   : > { %1537 = dma.done.wait (%p1649_p6), %s161_s5, 640  }
  0x37   : > { %1539 = vsyncadd (%p1649_p6), %s161_s5, 4294966656  ;;  %v1720_v0 = vld [vmem:[%s1713_s8 + $0x8] sm:$0xff]  ;;  %v1723_v1 = vld [vmem:[%s1713_s8 + $0x10] sm:$0xff]  ;;  %s1561_s30 = smov 26   ;;  %s1562_s4 = smov 9   ;;  %v1579_v7 = vmov 0.0   ;;  %v187_v11 = vlaneseq }
  0x38   : > { %v1727_v2 = vpack.i.bf16 %v1723_v1, %v1720_v0  ;;  %s1563_s22 = smov 24   ;;  %s1564_s6 = smov 8   ;;  %v1734_v3 = vld [vmem:[%s1713_s8] sm:$0xff]  ;;  %v1739_v4 = vld [vmem:[%s1713_s8 + $0x18] sm:$0xff]  ;;  %v1395_v6 = vpack.i.bf16 %v1720_v0, %v1720_v0  ;;  %420 = vmatprep.mubr.f32.mxu0 %v1579_v7  ;;  %637 = vmatprep.mubr.f32.mxu1 %v1579_v7  ;;  %v1585_v15 = vmov 0   ;;  %vm232_vm0 = vcmask 72704  }
  0x39   : > { %v1745_v5 = vpack.i.bf16 %v1739_v4, %v1723_v1  ;;  %s1565_s7 = smov 121   ;;  %s1566_s9 = smov 7   ;;  %v1435_v8 = vpack.i.bf16 %v1723_v1, %v1734_v3  ;;  %v1445_v9 = vpack.i.bf16 %v1734_v3, %v1720_v0  ;;  %v1455_v10 = vpack.i.bf16 %v1739_v4, %v1739_v4  ;;  %v887_v14 = vld [vmem:[%s1713_s8 + $0x20] sm:$0xff]  ;;  %1461 = vset.pattern.permute.xlu1 %v1585_v15  ;;  %v1123_v42 = vld [vmem:[%s2194_s2 + $0x10] sm:$0xff]  ;;  %v1140_v43 = vld [vmem:[%s2194_s2 + $0x18] sm:$0xff] }
  0x3a   : > { %1346 = vrot.lane.b32.xlu1 %v1727_v2, %s1561_s30  ;;  %1336 = vrot.lane.b32.xlu0 %v1727_v2, %s1562_s4  ;;  %s1567_s10 = smov 122   ;;  %s1568_s11 = smov 22   ;;  %v188_v12 = vand.u32 127, %v187_v11  ;;  %v1106_v24 = vld [vmem:[%s2194_s2 + $0x8] sm:$0xff]  ;;  %v346_v25 = vld [vmem:[%s2194_s2] sm:$0xff]  ;;  %vm318_vm2 = vcmask 64512  }
  0x3b   : > { %s1569_s17 = smov 120   ;;  %s1570_s19 = smov 119   ;;  %1460 = vset.pattern.permute.xlu0 %v1585_v15  ;;  %vm449_vm4 = vcmask 211968   ;;  %vm535_vm5 = vcmask 195584   ;;  %vm2197_vm6 = vmmov 1   ;;  %vm266_vm14 = vcmask 990208  }
  0x3c   : > { %s1571_s20 = smov 118   ;;  %s1572_s25 = smov 105   ;;  %v189_v13 = vadd.s32 128, %v188_v12  ;;  %v1825_v19 = vand.u32 15, %v188_v12  ;;  %vm251_vm15 = vcmask 56320  }
  0x3d   : > { %s1573_s26 = smov 90   ;;  %s1574_s27 = smov 104  }
  0x3e   : > { %1351 = vrot.lane.b32.xlu1 %v1727_v2, %s1563_s22  ;;  %1341 = vrot.lane.b32.xlu0 %v1727_v2, %s1564_s6  ;;  %s1575_s29 = smov 88   ;;  %s1576_s5 = smov 103   ;;  %v1820_v16 = vand.u32 15, %v189_v13  ;;  %vm217_vm8 = vcmp.ge.s32.totalorder %v1825_v19, 1  ;;  %vm434_vm11 = vcmp.ge.s32.totalorder %v1825_v19, 2 }
  0x3f   : > { %vm1864_vm10 = vmpackc.low %vm2197_vm6, %vm217_vm8  ;;  %p2241_p11 = scmp.ne.s32.totalorder %s2207_s23, 0 }
  0x40   : > { %vm218_vm1 = vcmp.ge.s32.totalorder %v1820_v16, 1  ;;  %vm435_vm3 = vcmp.ge.s32.totalorder %v1820_v16, 2  ;;  %vm1880_vm12 = vmpackc.low %vm2197_vm6, %vm434_vm11  ;;  %vm240_vm13 = vcmp.lt.s32.totalorder %v1820_v16, 15 }
  0x41   : > { %vm1837_vm7 = vmpackc.low %vm2197_vm6, %vm218_vm1 }
  0x42   : > { %312 = vrot.lane.b32.xlu1 %v1734_v3, %s1564_s6  ;;  %226 = vrot.lane.b32.xlu0 %v1734_v3, %s1562_s4  ;;  %s1578_s4 = smov 60   ;;  %s1581_s6 = smov 52   ;;  %vm1849_vm9 = vmpackc.low %vm2197_vm6, %vm435_vm3  ;;  %vm239_vm6 = vcmp.lt.s32.totalorder %v1825_v19, 15 }
  0x46   : > { %529 = vrot.lane.b32.xlu1 %v1734_v3, %s1563_s22  ;;  %443 = vrot.lane.b32.xlu0 %v1734_v3, %s1561_s30  ;;  %s1577_s30 = smov 86   ;;  %s1580_s22 = smov 56  }
  0x4a   : > { %1361 = vrot.lane.b32.xlu1 %v1745_v5, %s1565_s7  ;;  %1356 = vrot.lane.b32.xlu0 %v1727_v2, %s1566_s9 }
  0x4e   : > { %1371 = vrot.lane.b32.xlu1 %v1745_v5, %s1567_s10  ;;  %1366 = vrot.lane.b32.xlu0 %v1727_v2, %s1568_s11 }
  0x52   : > { %260 = vrot.lane.b32.xlu1 %v1720_v0, %s1565_s7  ;;  %245 = vrot.lane.b32.xlu0 %v1734_v3, %s1566_s9  ;;  %s1582_s7 = smov 124   ;;  %s1583_s9 = smov 112  }
  0x56   : > { %477 = vrot.lane.b32.xlu1 %v1720_v0, %s1567_s10  ;;  %462 = vrot.lane.b32.xlu0 %v1734_v3, %s1568_s11  ;;  %s1584_s10 = smov 116  }
  0x5a   : > { %1381 = vrot.lane.b32.xlu1 %v1745_v5, %s1569_s17  ;;  %1376 = vrot.lane.b32.xlu0 %v1745_v5, %s1570_s19 }
  0x5e   : > { %1391 = vrot.lane.b32.xlu1 %v1745_v5, %s1569_s17  ;;  %1386 = vrot.lane.b32.xlu0 %v1745_v5, %s1571_s20 }
  0x62   : > { %1396 = vrot.lane.b32.xlu1 %v1395_v6, %s1569_s17  ;;  %273 = vrot.lane.b32.xlu0 %v1720_v0, %s1570_s19 }
  0x66   : > { %1401 = vrot.lane.b32.xlu1 %v1745_v5, %s1572_s25  ;;  %490 = vrot.lane.b32.xlu0 %v1720_v0, %s1571_s20 }
  0x6a   : > { %1411 = vrot.lane.b32.xlu1 %v1745_v5, %s1573_s26  ;;  %1406 = vrot.lane.b32.xlu0 %v1745_v5, %s1574_s27 }
  0x6e   : > { %286 = vrot.lane.b32.xlu1 %v1720_v0, %s1572_s25  ;;  %1416 = vrot.lane.b32.xlu0 %v1745_v5, %s1575_s29 }
  0x72   : > { %503 = vrot.lane.b32.xlu1 %v1720_v0, %s1573_s26  ;;  %334 = vrot.lane.b32.xlu0 %v1720_v0, %s1574_s27  ;;  %s1587_s27 = smov [#allocation5]  }
  0x76   : > { %301 = vrot.lane.b32.xlu1 %v1723_v1, %s1576_s5  ;;  %550 = vrot.lane.b32.xlu0 %v1720_v0, %s1575_s29  ;;  %s1496_s29 = sshll.u32 %s1587_s27, 4  ;;  %s1497_s29 = int_to_ptr.vmem [resolvable:$false] %s1496_s29 }
  0x7a   : > { %518 = vrot.lane.b32.xlu1 %v1723_v1, %s1577_s30  ;;  %303 = vrot.lane.b32.xlu0 %v1739_v4, %s1576_s5 }
  0x7e   : > { %1421 = vrot.lane.b32.xlu1 %v1727_v2, %s1578_s4  ;;  %520 = vrot.lane.b32.xlu0 %v1739_v4, %s1577_s30 }
  0x82   : > { %1431 = vrot.lane.b32.xlu1 %v1727_v2, %s1569_s17  ;;  %1426 = vrot.lane.b32.xlu0 %v1727_v2, %s1580_s22 }
  0x86   : > { %516 = vrot.lane.b32.xlu1 %v1720_v0, %s1577_s30  ;;  %299 = vrot.lane.b32.xlu0 %v1720_v0, %s1576_s5  ;;  %s1498_s5 = scalar_lea.vmem %s1497_s29, 2048 }
  0x8a   : > { %731 = vrot.lane.b32.xlu1 %v1734_v3, %s1580_s22  ;;  %659 = vrot.lane.b32.xlu0 %v1734_v3, %s1578_s4 }
  0x8e   : > { %680 = vrot.lane.b32.xlu1 %v1720_v0, %s1581_s6  ;;  %1436 = vrot.lane.b32.xlu0 %v1435_v8, %s1569_s17 }
  0x92   : > { %1441 = vrot.lane.b32.xlu1 %v1745_v5, %s1582_s7  ;;  %682 = vrot.lane.b32.xlu0 %v1723_v1, %s1581_s6 }
  0x96   : > { %866 = vrot.lane.b32.xlu1 %v1723_v1, %s1583_s9  ;;  %1446 = vrot.lane.b32.xlu0 %v1445_v9, %s1583_s9 }
  0x9a   : > { %693 = vrot.lane.b32.xlu1 %v1720_v0, %s1582_s7  ;;  %678 = vrot.lane.b32.xlu0 %v1734_v3, %s1581_s6 }
  0x9e   : > { %1456 = vrot.lane.b32.xlu1 %v1455_v10, %s1569_s17  ;;  %1451 = vrot.lane.b32.xlu0 %v1745_v5, %s1584_s10 }
  0xa2   : > { %706 = vrot.lane.b32.xlu1 %v1720_v0, %s1584_s10  ;;  %879 = vrot.lane.b32.xlu0 %v1739_v4, %s1583_s9  ;;  %s1091_s10 = sshll.u32 %s1709_s28, 6 }
  0xa3   : > { %s186_s8 = scalar_lea.vmem [#allocation5], %s1091_s10 }
  0xa4   : > { %s1013_s11 = sshll.u32 %s186_s8, 4  ;;  %s2143_s11 = int_to_ptr.vmem [resolvable:$true] %s1013_s11 }
  0xa5   : > { %s1492_s26 = scalar_lea.vmem %s2143_s11, 1024  ;;  %p1499_p5 = scmp.lt.s32.totalorder %s2143_s11, %s1497_s29 }
  0xa6   : > { %719 = vrot.lane.b32.xlu1 %v1739_v4, %s1578_s4  ;;  %742 = vrot.lane.b32.xlu0 %v1720_v0, %s1569_s17  ;;  %p1493_p6 = scmp.ne.s32.totalorder %s2143_s11, %s1492_s26  ;;  %p1500_p10 = scmp.lt.s32.totalorder %s1498_s5, %s1492_s26 }
  0xa8   : > { %p1494_p12 = pnand %p1493_p6, %p2241_p11  ;;  %p1501_p2 = por %p1500_p10, %p1499_p5 }
  0xaa   : > { %909 = vrot.lane.b32.xlu1 %v887_v14, %s1569_s17  ;;  %752 = vrot.lane.b32.xlu0 %v1739_v4, %s1580_s22  ;;  %s1161_s17 = sshll.u32 %s1631_s16, 10  ;;  %s1000_s16 = scalar_lea.sflag [#allocation4], %s1709_s28 }
  0xab   : > { %s2148_s25 = scalar_lea.hbm %s2195_s3, %s1161_s17  ;;  %p1495_p13 = pneg %p1494_p12 }
  0xac   : > { %v1347_v17 = vpop.permute.xlu1 %1346  ;;  %v1337_v18 = vpop.permute.xlu0 %1336 }
  0xad   : > { %v1349_v20 = vunpack.i.h.bf16 %v1347_v17  ;;  %v1348_v21 = vunpack.i.l.bf16 %v1347_v17  ;;  %v1339_v22 = vunpack.i.h.bf16 %v1337_v18  ;;  %v1338_v23 = vunpack.i.l.bf16 %v1337_v18  ;;  %p1502_p4 = pnand %p1501_p2, %p1495_p13 }
  0xae   : > { %889 = vrot.lane.b32.xlu1 %v887_v14, %s1583_s9  ;;  %725 = vrot.lane.b32.xlu0 %v1739_v4, %s1581_s6 }
  0xaf   : > { %v234_v33 = vsel %vm232_vm0, %v1338_v23, %v1339_v22  ;;  %v451_v35 = vsel %vm449_vm4, %v1348_v21, %v1349_v20 }
  0xb0   : > { %v1352_v26 = vpop.permute.xlu1 %1351  ;;  %v1342_v27 = vpop.permute.xlu0 %1341 }
  0xb1   : > { %v1354_v28 = vunpack.i.h.bf16 %v1352_v26  ;;  %v1353_v29 = vunpack.i.l.bf16 %v1352_v26  ;;  %v1344_v30 = vunpack.i.h.bf16 %v1342_v27  ;;  %v1343_v31 = vunpack.i.l.bf16 %v1342_v27 }
  0xb2   : > { %567 = vperm.xlu1 %1461, %v1106_v24   ;;  %349 = vperm.xlu0 %1460, %v346_v25  }
  0xb3   : > { %v320_v34 = vsel %vm318_vm2, %v1343_v31, %v1344_v30  ;;  %v537_v36 = vsel %vm535_vm5, %v1353_v29, %v1354_v28 }
  0xb4   : > { %v313_v38 = vpop.permute.xlu1 %312  ;;  %v227_v39 = vpop.permute.xlu0 %226  ;;  %v1162_v40 = vpack.c.bf16 %v320_v34, %v234_v33  ;;  %v1186_v41 = vpack.c.bf16 %v537_v36, %v451_v35 }
  0xb5   : > { %v319_v44 = vsel %vm318_vm2, %v313_v38, %v1343_v31  ;;  %v233_v45 = vsel %vm232_vm0, %v227_v39, %v1338_v23  ;;  %vm1169_vm0 = vmpackc.low %vm218_vm1, %vm240_vm13  ;;  %vm457_vm2 = vcmp.lt.s32.totalorder %v1820_v16, 14 }
  0xb6   : > { %v1165_v47 = vpack.c.bf16 %v319_v44, %v233_v45  ;;  %1164 = vmatprep.subr.msk.bf16.mxu0 %vm1837_vm7, %v1162_v40  ;;  %1188 = vmatprep.subr.msk.bf16.mxu1 %vm1849_vm9, %v1186_v41  ;;  %vm1193_vm1 = vmpackc.low %vm435_vm3, %vm457_vm2  ;;  %vm456_vm3 = vcmp.lt.s32.totalorder %v1825_v19, 14 }
  0xb7   : > { %762 = vperm.xlu1 %1461, %v1123_v42   ;;  %919 = vperm.xlu0 %1460, %v1140_v43  }
  0xb8   : > { %v530_v48 = vpop.permute.xlu1 %529  ;;  %1167 = vmatpush1.bf16.msk.msra.mxu0 %vm1864_vm10, %v1165_v47  ;;  %v444_v49 = vpop.permute.xlu0 %443 }
  0xb9   : > { %v536_v50 = vsel %vm535_vm5, %v530_v48, %v1353_v29  ;;  %v450_v51 = vsel %vm449_vm4, %v444_v49, %v1348_v21  ;;  %vm483_vm4 = vcmask 998400   ;;  %vm468_vm5 = vcmask 179200  }
  0xba   : > { %v1189_v53 = vpack.c.bf16 %v536_v50, %v450_v51 }
  0xbc   : > { %v1362_v54 = vpop.permute.xlu1 %1361  ;;  %1191 = vmatpush1.bf16.msk.msra.mxu1 %vm1880_vm12, %v1189_v53  ;;  %v1357_v55 = vpop.permute.xlu0 %1356 }
  0xbd   : > { %v1364_v56 = vunpack.i.h.bf16 %v1362_v54  ;;  %v1363_v57 = vunpack.i.l.bf16 %v1362_v54  ;;  %v1359_v58 = vunpack.i.h.bf16 %v1357_v55  ;;  %v1358_v59 = vunpack.i.l.bf16 %v1357_v55 }
  0xbf   : > { %v268_v60 = vsel %vm266_vm14, %v1363_v57, %v1364_v56  ;;  %v253_v61 = vsel %vm251_vm15, %v1358_v59, %v1359_v58 }
  0xc0   : > { %v1168_v62 = vpack.c.bf16 %v268_v60, %v253_v61  ;;  %v1372_v63 = vpop.permute.xlu1 %1371  ;;  %v1367_v2 = vpop.permute.xlu0 %1366 }
  0xc1   : > { %v1374_v5 = vunpack.i.h.bf16 %v1372_v63  ;;  %v1373_v6 = vunpack.i.l.bf16 %v1372_v63  ;;  %v1369_v8 = vunpack.i.h.bf16 %v1367_v2  ;;  %v1368_v9 = vunpack.i.l.bf16 %v1367_v2 }
  0xc2   : > { %1170 = vmatprep.subr.msk.bf16.mxu0 %vm1169_vm0, %v1168_v62  ;;  %vm1172_vm0 = vmpackc.low %vm217_vm8, %vm239_vm6  ;;  %vm279_vm8 = vcmask 973824  }
  0xc3   : > { %v485_v10 = vsel %vm483_vm4, %v1373_v6, %v1374_v5  ;;  %v470_v11 = vsel %vm468_vm5, %v1368_v9, %v1369_v8 }
  0xc4   : > { %v1192_v12 = vpack.c.bf16 %v485_v10, %v470_v11  ;;  %v261_v13 = vpop.permute.xlu1 %260  ;;  %v246_v14 = vpop.permute.xlu0 %245 }
  0xc5   : > { %v267_v15 = vsel %vm266_vm14, %v261_v13, %v1363_v57  ;;  %v252_v17 = vsel %vm251_vm15, %v246_v14, %v1358_v59  ;;  %vm1196_vm14 = vmpackc.low %vm434_vm11, %vm456_vm3  ;;  %vm2202_vm15 = vcmask 982016   ;;  %vm496_vm11 = vcmask 965632  }
  0xc6   : > { %v1171_v18 = vpack.c.bf16 %v267_v15, %v252_v17  ;;  %1194 = vmatprep.subr.msk.bf16.mxu1 %vm1193_vm1, %v1192_v12 }
  0xc8   : > { %v478_v20 = vpop.permute.xlu1 %477  ;;  %v463_v21 = vpop.permute.xlu0 %462  ;;  %1173 = vmatpush1.bf16.msk.msra.mxu0 %vm1172_vm0, %v1171_v18 }
  0xc9   : > { %v484_v22 = vsel %vm483_vm4, %v478_v20, %v1373_v6  ;;  %v469_v23 = vsel %vm468_vm5, %v463_v21, %v1368_v9  ;;  %vm2220_vm4 = vmmov 1  }
  0xca   : > { %v1195_v24 = vpack.c.bf16 %v484_v22, %v469_v23  ;;  %vm1175_vm5 = vmpackc.low %vm240_vm13, %vm2220_vm4 }
  0xcb   : > { %vm1199_vm1 = vmpackc.low %vm457_vm2, %vm2220_vm4 }
  0xcc   : > { %v1382_v25 = vpop.permute.xlu1 %1381  ;;  %v1377_v26 = vpop.permute.xlu0 %1376  ;;  %1197 = vmatpush1.bf16.msk.msra.mxu1 %vm1196_vm14, %v1195_v24  ;;  %vm1178_vm0 = vmpackc.low %vm239_vm6, %vm2220_vm4 }
  0xcd   : > { %v1384_v27 = vunpack.i.h.bf16 %v1382_v25  ;;  %v1383_v28 = vunpack.i.l.bf16 %v1382_v25  ;;  %v1379_v29 = vunpack.i.h.bf16 %v1377_v26  ;;  %v1378_v30 = vunpack.i.l.bf16 %v1377_v26  ;;  %vm1202_vm14 = vmpackc.low %vm456_vm3, %vm2220_vm4 }
  0xcf   : > { %v331_v31 = vsel %vm2202_vm15, %v1383_v28, %v1384_v27  ;;  %v281_v33 = vsel %vm279_vm8, %v1378_v30, %v1379_v29 }
  0xd0   : > { %v1174_v34 = vpack.c.bf16 %v281_v33, %v331_v31  ;;  %v1392_v35 = vpop.permute.xlu1 %1391  ;;  %v1387_v36 = vpop.permute.xlu0 %1386 }
  0xd1   : > { %v1394_v38 = vunpack.i.h.bf16 %v1392_v35  ;;  %v1393_v39 = vunpack.i.l.bf16 %v1392_v35  ;;  %v1389_v40 = vunpack.i.h.bf16 %v1387_v36  ;;  %v1388_v41 = vunpack.i.l.bf16 %v1387_v36 }
  0xd2   : > { %1176 = vmatprep.subr.msk.bf16.mxu0 %vm1175_vm5, %v1174_v34  ;;  %vm292_vm5 = vcmask 859136  }
  0xd3   : > { %v547_v42 = vsel %vm2202_vm15, %v1393_v39, %v1394_v38  ;;  %v498_v43 = vsel %vm496_vm11, %v1388_v41, %v1389_v40 }
  0xd4   : > { %v1198_v44 = vpack.c.bf16 %v498_v43, %v547_v42  ;;  %v1397_v45 = vpop.permute.xlu1 %1396  ;;  %v274_v47 = vpop.permute.xlu0 %273 }
  0xd5   : > { %v1399_v48 = vunpack.i.h.bf16 %v1397_v45  ;;  %v1398_v49 = vunpack.i.l.bf16 %v1397_v45  ;;  %v280_v51 = vsel %vm279_vm8, %v274_v47, %v1378_v30  ;;  %vm340_vm8 = vcmask 850944  }
  0xd6   : > { %1200 = vmatprep.subr.msk.bf16.mxu1 %vm1199_vm1, %v1198_v44  ;;  %vm509_vm1 = vcmask 736256  }
  0xd7   : > { %v330_v50 = vsel %vm2202_vm15, %v1398_v49, %v1383_v28  ;;  %v546_v56 = vsel %vm2202_vm15, %v1399_v48, %v1393_v39 }
  0xd8   : > { %v1177_v53 = vpack.c.bf16 %v280_v51, %v330_v50  ;;  %v1402_v54 = vpop.permute.xlu1 %1401  ;;  %v491_v55 = vpop.permute.xlu0 %490 }
  0xd9   : > { %v497_v57 = vsel %vm496_vm11, %v491_v55, %v1388_v41  ;;  %v1404_v59 = vunpack.i.h.bf16 %v1402_v54  ;;  %v1403_v60 = vunpack.i.l.bf16 %v1402_v54  ;;  %vm556_vm11 = vcmask 719872   ;;  %v345_v55 = vld [vmem:[%s2193_s1] sm:$0xff] }
  0xda   : > { %v1201_v58 = vpack.c.bf16 %v497_v57, %v546_v56  ;;  %1179 = vmatpush1.bf16.msk.msra.mxu0 %vm1178_vm0, %v1177_v53  ;;  %vm845_vm0 = vcmp.ge.s32.totalorder %v1820_v16, 8  ;;  %v1105_v56 = vld [vmem:[%s2193_s1 + $0x8] sm:$0xff] }
  0xdb   : > { %v294_v9 = vsel %vm292_vm5, %v1403_v60, %v1404_v59 }
  0xdc   : > { %v1412_v61 = vpop.permute.xlu1 %1411  ;;  %v1407_v62 = vpop.permute.xlu0 %1406  ;;  %1203 = vmatpush1.bf16.msk.msra.mxu1 %vm1202_vm14, %v1201_v58  ;;  %vm1995_vm14 = vmpackc.low %vm2220_vm4, %vm845_vm0 }
  0xdd   : > { %v1409_v63 = vunpack.i.h.bf16 %v1407_v62  ;;  %v1408_v2 = vunpack.i.l.bf16 %v1407_v62  ;;  %v1414_v5 = vunpack.i.h.bf16 %v1412_v61  ;;  %v1413_v6 = vunpack.i.l.bf16 %v1412_v61 }
  0xdf   : > { %v342_v8 = vsel %vm340_vm8, %v1408_v2, %v1409_v63  ;;  %v511_v17 = vsel %vm509_vm1, %v1413_v6, %v1414_v5 }
  0xe0   : > { %v287_v10 = vpop.permute.xlu1 %286  ;;  %v1180_v11 = vpack.c.bf16 %v342_v8, %v294_v9  ;;  %v1417_v12 = vpop.permute.xlu0 %1416 }
  0xe1   : > { %v1419_v13 = vunpack.i.h.bf16 %v1417_v12  ;;  %v1418_v14 = vunpack.i.l.bf16 %v1417_v12  ;;  %v293_v22 = vsel %vm292_vm5, %v287_v10, %v1403_v60  ;;  %vm2203_vm5 = vcmp.ge.s32.totalorder %v1825_v19, 4 }
  0xe2   : > { %1182 = vmatprep.subr.msk.bf16.mxu0 %vm1837_vm7, %v1180_v11  ;;  %vm305_vm7 = vcmask 842752  }
  0xe3   : > { %v558_v15 = vsel %vm556_vm11, %v1418_v14, %v1419_v13 }
  0xe4   : > { %v504_v18 = vpop.permute.xlu1 %503  ;;  %v1204_v20 = vpack.c.bf16 %v558_v15, %v511_v17  ;;  %v335_v21 = vpop.permute.xlu0 %334 }
  0xe5   : > { %v341_v23 = vsel %vm340_vm8, %v335_v21, %v1408_v2  ;;  %v510_v32 = vsel %vm509_vm1, %v504_v18, %v1413_v6  ;;  %vm2199_vm8 = vcmask 588800   ;;  %vm684_vm1 = vcmask 424960  }
  0xe6   : > { %v1183_v24 = vpack.c.bf16 %v341_v23, %v293_v22  ;;  %1206 = vmatprep.subr.msk.bf16.mxu1 %vm1849_vm9, %v1204_v20  ;;  %vm522_vm9 = vcmask 703488  }
  0xe8   : > { %v302_v25 = vpop.permute.xlu1 %301  ;;  %v551_v26 = vpop.permute.xlu0 %550  ;;  %1185 = vmatpush1.bf16.msk.msra.mxu0 %vm1864_vm10, %v1183_v24  ;;  %vm2201_vm10 = vcmask 490496  }
  0xe9   : > { %v557_v27 = vsel %vm556_vm11, %v551_v26, %v1418_v14 }
  0xea   : > { %v1207_v28 = vpack.c.bf16 %v557_v27, %v510_v32 }
  0xec   : > { %v519_v29 = vpop.permute.xlu1 %518  ;;  %v304_v30 = vpop.permute.xlu0 %303  ;;  %1209 = vmatpush1.bf16.msk.msra.mxu1 %vm1880_vm12, %v1207_v28  ;;  %vm2200_vm12 = vcmask 457728  }
  0xed   : > { %v307_v31 = vsel %vm305_vm7, %v302_v25, %v304_v30 }
  0xee   : > { %1102 = vmatprep.subr.msk.mxu0 %vm240_vm13, %v307_v31  ;;  %vm651_vm13 = vcmp.ge.s32.totalorder %v1820_v16, 4 }
  0xf0   : > { %v1953_v37 = vpop.permute.xlu1 %1421  ;;  %v521_v46 = vpop.permute.xlu0 %520 }
  0xf1   : > { %v524_v33 = vsel %vm522_vm9, %v519_v29, %v521_v46  ;;  %v1424_v34 = vunpack.i.h.bf16 %v1953_v37  ;;  %v1423_v35 = vunpack.i.l.bf16 %v1953_v37 }
  0xf2   : > { %1117 = vmatprep.subr.msk.mxu1 %vm457_vm2, %v524_v33  ;;  %vm1984_vm2 = vmpackc.low %vm2220_vm4, %vm651_vm13 }
  0xf3   : > { %v667_v42 = vsel %vm2201_vm10, %v1423_v35, %v1424_v34 }
  0xf4   : > { %v1960_v52 = vpop.permute.xlu1 %1431  ;;  %v1962_v36 = vpop.permute.xlu0 %1426 }
  0xf5   : > { %v1434_v38 = vunpack.i.h.bf16 %v1960_v52  ;;  %v1433_v39 = vunpack.i.l.bf16 %v1960_v52  ;;  %v1429_v40 = vunpack.i.h.bf16 %v1962_v36  ;;  %v1428_v41 = vunpack.i.l.bf16 %v1962_v36 }
  0xf7   : > { %v1976_v43 = vsel %vm2202_vm15, %v1433_v39, %v1434_v38  ;;  %v739_v44 = vsel %vm2200_vm12, %v1428_v41, %v1429_v40 }
  0xf8   : > { %v1234_v47 = vpack.c.bf16 %v1976_v43, %v1720_v0  ;;  %v1990_v48 = vpack.c.bf16 %v739_v44, %v667_v42  ;;  %v517_v49 = vpop.permute.xlu1 %516  ;;  %v300_v50 = vpop.permute.xlu0 %299 }
  0xf9   : > { %v523_v53 = vsel %vm522_vm9, %v517_v49, %v519_v29  ;;  %v306_v54 = vsel %vm305_vm7, %v300_v50, %v302_v25  ;;  %vm699_vm7 = vcmask 1014784   ;;  %vm673_vm9 = vcmp.lt.s32.totalorder %v1820_v16, 12 }
  0xfa   : > { %1103 = vmatpush1.msk.msra.mxu0 %vm239_vm6, %v306_v54  ;;  %1118 = vmatpush1.msk.msra.mxu1 %vm456_vm3, %v523_v53  ;;  %vm2024_vm6 = vmpackc.low %vm2220_vm4, %vm2203_vm5  ;;  %vm844_vm3 = vcmp.ge.s32.totalorder %v1825_v19, 8  ;;  %vm672_vm5 = vcmp.lt.s32.totalorder %v1825_v19, 12 }
  0xfb   : > { %1212 = vmatprep.subr.msk.bf16.mxu0 %vm1984_vm2, %v1990_v48  ;;  %1236 = vmatprep.subr.msk.bf16.mxu1 %vm1995_vm14, %v1234_v47  ;;  %vm2040_vm11 = vmpackc.low %vm2220_vm4, %vm844_vm3 }
  0xfc   : > { %v732_v57 = vpop.permute.xlu1 %731  ;;  %v660_v58 = vpop.permute.xlu0 %659  ;;  %1104 = vmatmul.mubr.msk.f32.vlgmr.msra.gmra.mrb[0].mxu0 %vm2199_vm8, %v345_v55  ;;  %1119 = vmatmul.mubr.msk.f32.vlgmr.msra.gmra.mrb[0].mxu1 %vm2199_vm8, %v1105_v56  ;;  %vm1217_vm8 = vmpackc.low %vm651_vm13, %vm673_vm9 }
  0xfd   : > { %v738_v59 = vsel %vm2200_vm12, %v732_v57, %v1428_v41  ;;  %v666_v60 = vsel %vm2201_vm10, %v660_v58, %v1423_v35  ;;  %832 = vmatprep.mubr.f32.mxu0 %v1579_v7  ;;  %989 = vmatprep.mubr.f32.mxu1 %v1579_v7  ;;  %vm2204_vm12 = vcmask 916480   ;;  %vm2205_vm10 = vcmp.lt.s32.totalorder %v1820_v16, 8 }
  0xfe   : > { %v1213_v62 = vpack.c.bf16 %v738_v59, %v666_v60  ;;  %vm1241_vm13 = vmpackc.low %vm845_vm0, %vm2205_vm10  ;;  %vm712_vm10 = vcmask 949248  }
 0x100   : > { %v681_v63 = vpop.permute.xlu1 %680  ;;  %v2030_v2 = vpop.permute.xlu0 %1436  ;;  %1215 = vmatpush1.bf16.msk.msra.mxu0 %vm2024_vm6, %v1213_v62 }
 0x101   : > { %v1438_v5 = vunpack.i.l.bf16 %v2030_v2 }
 0x103   : > { %v901_v6 = vsel %vm2202_vm15, %v1438_v5, %v1433_v39  ;;  %vm853_vm15 = vcmp.lt.s32.totalorder %v1825_v19, 8 }
 0x104   : > { %v1237_v7 = vpack.c.bf16 %v901_v6, %v1734_v3  ;;  %v1442_v9 = vpop.permute.xlu1 %1441  ;;  %v2045_v10 = vpop.permute.xlu0 %682 }
 0x105   : > { %v1444_v11 = vunpack.i.h.bf16 %v1442_v9  ;;  %v1443_v12 = vunpack.i.l.bf16 %v1442_v9  ;;  %v2053_v14 = vsel %vm684_vm1, %v681_v63, %v2045_v10 }
 0x106   : > { %1239 = vmatpush1.bf16.msk.msra.mxu1 %vm2040_vm11, %v1237_v7 }
 0x107   : > { %v701_v13 = vsel %vm699_vm7, %v1443_v12, %v1444_v11 }
 0x108   : > { %v1216_v3 = vpack.c.bf16 %v701_v13, %v2053_v14  ;;  %v867_v15 = vpop.permute.xlu1 %866  ;;  %v1447_v17 = vpop.permute.xlu0 %1446 }
 0x109   : > { %v1449_v18 = vunpack.i.h.bf16 %v1447_v17  ;;  %v1448_v20 = vunpack.i.l.bf16 %v1447_v17 }
 0x10a   : > { %1218 = vmatprep.subr.msk.bf16.mxu0 %vm1217_vm8, %v1216_v3  ;;  %vm1244_vm8 = vmpackc.low %vm844_vm3, %vm853_vm15  ;;  %vm2230_vm3 = vcmask 982016  }
 0x10b   : > { %v869_v21 = vsel %vm2204_vm12, %v1449_v18, %v1448_v20  ;;  %v870_v22 = vsel %vm2204_vm12, %v1448_v20, %v867_v15  ;;  %vm2229_vm12 = vcmp.ge.s32.totalorder %v1825_v19, 4 }
 0x10c   : > { %v1240_v23 = vpack.c.bf16 %v1723_v1, %v870_v22  ;;  %v1243_v24 = vpack.c.bf16 %v1720_v0, %v869_v21  ;;  %v694_v25 = vpop.permute.xlu1 %693  ;;  %v679_v26 = vpop.permute.xlu0 %678  ;;  %vm1220_vm0 = vmpackc.low %vm2229_vm12, %vm672_vm5  ;;  %v1439_v0 = vunpack.i.h.bf16 %v2030_v2  ;;  %v1249_v54 = vpack.c.bf16 %v870_v22, %v1976_v43 }
 0x10d   : > { %v700_v32 = vsel %vm699_vm7, %v694_v25, %v1443_v12  ;;  %v685_v27 = vsel %vm684_vm1, %v679_v26, %v681_v63  ;;  %vm1223_vm12 = vmpackc.low %vm673_vm9, %vm2220_vm4 }
 0x10e   : > { %v1219_v28 = vpack.c.bf16 %v700_v32, %v685_v27  ;;  %1242 = vmatprep.subr.msk.bf16.mxu1 %vm1241_vm13, %v1240_v23  ;;  %vm2231_vm7 = vmmov %vm2230_vm3  ;;  %vm2232_vm13 = vcmask 916480  }
 0x10f   : > { %1245 = vmatpush1.bf16.msk.msra.mxu1 %vm1244_vm8, %v1243_v24  ;;  %vm2233_vm8 = vcmp.lt.s32.totalorder %v1820_v16, 8 }
 0x110   : > { %v1457_v29 = vpop.permute.xlu1 %1456  ;;  %v1452_v30 = vpop.permute.xlu0 %1451  ;;  %1221 = vmatpush1.bf16.msk.msra.mxu0 %vm1220_vm0, %v1219_v28  ;;  %vm1247_vm0 = vmpackc.low %vm2233_vm8, %vm2220_vm4 }
 0x111   : > { %v1459_v31 = vunpack.i.h.bf16 %v1457_v29  ;;  %v1458_v46 = vunpack.i.l.bf16 %v1457_v29  ;;  %v1454_v33 = vunpack.i.h.bf16 %v1452_v30  ;;  %v1453_v35 = vunpack.i.l.bf16 %v1452_v30  ;;  %vm2235_vm8 = vmmov %vm2231_vm7 }
 0x113   : > { %v749_v39 = vsel %vm2230_vm3, %v1439_v0, %v1458_v46  ;;  %v714_v41 = vsel %vm712_vm10, %v1453_v35, %v1454_v33  ;;  %v907_v49 = vsel %vm2231_vm7, %v1434_v38, %v1459_v31  ;;  %vm1250_vm3 = vmpackc.low %vm853_vm15, %vm2220_vm4 }
 0x114   : > { %v707_v42 = vpop.permute.xlu1 %706  ;;  %v1222_v44 = vpack.c.bf16 %v714_v41, %v749_v39  ;;  %v880_v47 = vpop.permute.xlu0 %879  ;;  %v1255_v5 = vpack.c.bf16 %v907_v49, %v1723_v1  ;;  %v1122_v1 = vld [vmem:[%s2193_s1 + $0x10] sm:$0xff] }
 0x115   : > { %v881_v50 = vsel %vm2232_vm13, %v867_v15, %v880_v47  ;;  %v713_v52 = vsel %vm712_vm10, %v707_v42, %v1453_v35  ;;  %vm1226_vm13 = vmpackc.low %vm672_vm5, %vm2220_vm4  ;;  %vm2236_vm10 = vcmask 457728   ;;  %vm2237_vm4 = vcmask 916480  }
 0x116   : > { %v1246_v53 = vpack.c.bf16 %v881_v50, %v907_v49  ;;  %1224 = vmatprep.subr.msk.bf16.mxu0 %vm1223_vm12, %v1222_v44  ;;  %vm2234_vm12 = vcmask 490496  }
 0x118   : > { %v720_v55 = vpop.permute.xlu1 %719  ;;  %v743_v56 = vpop.permute.xlu0 %742  ;;  %1248 = vmatprep.subr.msk.bf16.mxu1 %vm1247_vm0, %v1246_v53 }
 0x119   : > { %v748_v38 = vsel %vm2231_vm7, %v743_v56, %v1439_v0  ;;  %1251 = vmatpush1.bf16.msk.msra.mxu1 %vm1250_vm3, %v1249_v54  ;;  %v721_v43 = vsel %vm2234_vm12, %v1424_v34, %v720_v55 }
 0x11a   : > { %v1225_v57 = vpack.c.bf16 %v713_v52, %v748_v38 }
 0x11c   : > { %v910_v58 = vpop.permute.xlu1 %909  ;;  %v753_v59 = vpop.permute.xlu0 %752  ;;  %1227 = vmatpush1.bf16.msk.msra.mxu0 %vm1226_vm13, %v1225_v57 }
 0x11d   : > { %v911_v60 = vsel %vm2235_vm8, %v1459_v31, %v910_v58  ;;  %v754_v62 = vsel %vm2236_vm10, %v1429_v40, %v753_v59 }
 0x11e   : > { %v1252_v63 = vpack.c.bf16 %v911_v60, %v1739_v4  ;;  %v1228_v2 = vpack.c.bf16 %v754_v62, %v721_v43  ;;  %v1139_v4 = vld [vmem:[%s2193_s1 + $0x18] sm:$0xff] }
 0x120   : > { %v890_v6 = vpop.permute.xlu1 %889  ;;  %v726_v7 = vpop.permute.xlu0 %725  ;;  %1230 = vmatprep.subr.msk.bf16.mxu0 %vm1984_vm2, %v1228_v2  ;;  %1254 = vmatprep.subr.msk.bf16.mxu1 %vm1995_vm14, %v1252_v63  ;;  %vm2238_vm2 = vcmp.lt.s32.totalorder %v1820_v16, 8  ;;  %vm2239_vm14 = vcmask 588800  }
 0x121   : > { %v891_v37 = vsel %vm2237_vm4, %v880_v47, %v890_v6  ;;  %v727_v34 = vsel %vm684_vm1, %v2045_v10, %v726_v7  ;;  %1233 = vmatpush1.bf16.msk.msra.mxu0 %vm2024_vm6, %v1990_v48  ;;  %1257 = vmatpush1.bf16.msk.msra.mxu1 %vm2040_vm11, %v1255_v5  ;;  %vm2240_vm6 = vmmov %vm2239_vm14 }
 0x122   : > { %1134 = vmatprep.subr.msk.mxu0 %vm673_vm9, %v727_v34  ;;  %1151 = vmatprep.subr.msk.mxu1 %vm2238_vm2, %v891_v37 }
 0x125   : > { %1135 = vmatpush1.msk.msra.mxu0 %vm672_vm5, %v2053_v14  ;;  %1152 = vmatpush1.msk.msra.mxu1 %vm853_vm15, %v881_v50 }
 0x126   : > { %1136 = vmatmul.mubr.msk.f32.vlgmr.msra.gmra.mrb[2].mxu0 %vm2239_vm14, %v1122_v1  ;;  %1153 = vmatmul.mubr.msk.f32.vlgmr.msra.gmra.mrb[2].mxu1 %vm2240_vm6, %v1139_v4 }
 0x131   : > { %v568_v16 = vpop.permute.xlu1 %567  ;;  %v350_v36 = vpop.permute.xlu0 %349 }
 0x136   : > { %v763_v12 = vpop.permute.xlu1 %762  ;;  %v920_v13 = vpop.permute.xlu0 %919 }
 0x1cf   : > { %v422_v40 = vpop.f32.mrb[0].mxu0  ;;  %v639_v45 = vpop.f32.mrb[0].mxu1 }
 0x1d0   : > { %v640_v48 = vadd.f32 %v639_v45, %v568_v16  ;;  %v423_v51 = vadd.f32 %v422_v40, %v350_v36  ;;  %v424_v61 = vpop.f32.mrb[1].mxu0  ;;  %v641_v8 = vpop.f32.mrb[1].mxu1 }
 0x1d1   : > { %v425_v9 = vadd.f32 %v424_v61, %v350_v36  ;;  %v642_v10 = vadd.f32 %v641_v8, %v568_v16 }
 0x1d2   : > { %1120 = vst [vmem:[%s186_s8 + $0x10] sm:$0xff] %v640_v48  ;;  %v427_v19 = vmax.f32 %v423_v51, 0.0 }
 0x1d3   : > { %v428_v11 = vmax.f32 %v425_v9, 0.0  ;;  %1121 = vst [vmem:[%s186_s8 + $0x18] sm:$0xff] %v642_v10 }
 0x1d4   : > { %429 = vst [vmem:[%s186_s8] sm:$0xff] %v427_v19 }
 0x1d5   : > { %430 = vst [vmem:[%s186_s8 + $0x8] sm:$0xff] %v428_v11 }
 0x1f9   : > { %v834_v14 = vpop.f32.mrb[2].mxu0  ;;  %v991_v3 = vpop.f32.mrb[2].mxu1 }
 0x1fa   : > { %v835_v15 = vadd.f32 %v834_v14, %v763_v12  ;;  %v992_v17 = vadd.f32 %v991_v3, %v920_v13  ;;  %v836_v18 = vpop.f32.mrb[3].mxu0  ;;  %v993_v20 = vpop.f32.mrb[3].mxu1 }
 0x1fb   : > { %v837_v21 = vadd.f32 %v836_v18, %v763_v12  ;;  %v994_v22 = vadd.f32 %v993_v20, %v920_v13 }
 0x1fc   : > { %1137 = vst [vmem:[%s186_s8 + $0x20] sm:$0xff] %v835_v15  ;;  %1154 = vst [vmem:[%s186_s8 + $0x30] sm:$0xff] %v992_v17 }
 0x1fd   : > { %1138 = vst [vmem:[%s186_s8 + $0x28] sm:$0xff] %v837_v21  ;;  %1155 = vst [vmem:[%s186_s8 + $0x38] sm:$0xff] %v994_v22 }
 0x1fe   : > { %1505 = shalt.err (!%p1502_p4)
}
 0x1ff   : > { %s1506_s30 = scalar_lea.hbm %s2148_s25, 1024  ;;  %s1510_s6 = scalar_lea.hbm %s2195_s3, 2048 }
 0x200   : > { %p1507_p7 = scmp.ne.s32.totalorder %s2148_s25, %s1506_s30  ;;  %p1511_p0 = scmp.lt.u32.totalorder %s2148_s25, %s2195_s3 }
 0x201   : > { %p1512_p1 = scmp.lt.u32.totalorder %s1510_s6, %s1506_s30  ;;  %p1514_p6 = scmp.lt.u32.totalorder %s1506_s30, %s2148_s25 }
 0x202   : > { %p1508_p8 = pnand %p1507_p7, %p2241_p11 }
 0x203   : > { %p1513_p3 = por %p1512_p1, %p1511_p0 }
 0x204   : > { %p1509_p9 = pneg %p1508_p8 }
 0x205   : > { %p1515_p12 = por %p1514_p6, %p1513_p3 }
 0x207   : > { %p1516_p13 = pnand %p1515_p12, %p1509_p9 }
 0x209   : > { %1519 = shalt.err (!%p1516_p13)
}
 0x20a   : > { %s1588_s10 = smov 256   ;;  %s1589_s8 = smov 16  }
 0x20b   : > { %1263 = dma.vmem_to_hbm [thread:$0]  (%p2241_p11), %s2143_s11, 1024, %s2148_s25, %s1000_s16, %s1588_s10, %s1588_s10, %s1589_s8  }
 0x20c PF: > { %s1028_s17 = sand.u32 1, %s1546_s12   ;;  %p2242_p5 = scmp.ne.s32.totalorder %s2208_s24, 0 }
 0x20d   : > { %p2243_p10 = scmp.ge.s32.totalorder %s1558_s15, 2  ;;  %s1029_s19 = scalar_lea.sflag [#allocation4], %s1028_s17 }
 0x20f   : > { %p1270_p2 = pnand %p2243_p10, %p2242_p5 }
 0x211   : > { %1541 = dma.done.wait (!%p1270_p2), %s1029_s19, 1024  }
 0x212   : > { %1543 = vsyncadd (!%p1270_p2), %s1029_s19, 4294966272  ;;  %p16_p4 = scmp.ge.s32.totalorder %s1635_s18, 4   ;;  %s2244_s12 = smov %s1550_s13 }
 0x213   : > { %s2245_s13 = smov %s1554_s14  ;;  %s2246_s14 = smov %s1647_s21 }
 0x214   : > { %s2247_s15 = smov %s1635_s18  ;;  %18 = sbr.rel (!%p16_p4) target bundleno = 5 (0x5), region = 86 }
 0x21b   :  { %1034 = vsyncpa [#allocation3], 1 }
 0x21c   :  { %1036 = vsyncpa [#allocation3 + $0x1], 1 }
 0x21d   :  { %1037 = vsyncpa [#allocation4], 1 }
 0x21e   :  { %1039 = vsyncpa [#allocation4 + $0x1], 1 }

</bundles_post_ra>
